<compile_context>
chip_gen: v5e
topology: v5e:2x2
jax: 0.10.0
libtpu: 0.0.40
codegen_flags: <defaults>
</compile_context>

<pallas_src>
import functools
import math

import jax
import jax.numpy as jnp
from jax.experimental import pallas as pl
from jax.experimental.pallas import tpu as pltpu

_EPS = 1e-5
_LANES = 128
_TARGET_BLOCK_BYTES = 4 * 1024 * 1024    # ~4 MiB of f32 working set per block
_VMEM_LIMIT_BYTES = 48 * 1024 * 1024     # < 64 MiB physical (v7x), < 128 MiB (v5e/v6e)


@functools.lru_cache(maxsize=None)
def _grid_dim_semantics():
    """Best-effort: shard the row grid over both TensorCores on multi-TC chips.

    On single-TC chips (v5e/v6e) this returns the known-good ("parallel",).
    """
    try:
        info = pltpu.get_tpu_info()
        n_cores = 1
        for attr in ("num_cores", "core_count", "num_tensorcores",
                     "tensorcores_per_chip", "cores_per_chip"):
            v = getattr(info, attr, None)
            if isinstance(v, int) and v > n_cores:
                n_cores = v
        if n_cores > 1:
            return (pltpu.CORE_PARALLEL,)
    except Exception:
        pass
    return ("parallel",)


def _pick_rows_per_block(total_rows, lane_width, dtype_bytes,
                         target_bytes=_TARGET_BLOCK_BYTES):
    """Rows per block so one *f32* working-set block is ~target_bytes.

    Sized against max(dtype_bytes, 4) because the kernel materializes f32
    temporaries even for bf16 inputs; aligned to the dtype's min sublane tile.
    """
    work_bytes = max(4, dtype_bytes)
    tm = max(1, target_bytes // (lane_width * work_bytes))
    if tm >= total_rows:
        return total_rows                      # full extent: any row count allowed
    sublane = 8 * max(1, 4 // dtype_bytes)     # 8 (f32), 16 (bf16), 32 (int8/fp8)
    tm = max(sublane, (tm // sublane) * sublane)
    return min(tm, total_rows)


def _ln_rows_kernel(x_ref, w_ref, b_ref, o_ref, *, inv_c):
    # General path: x_ref (tm, C); w_ref/b_ref (1, C) f32; reduce over last axis.
    x = x_ref[...].astype(jnp.float32)
    mu = jnp.sum(x, axis=-1, keepdims=True) * inv_c
    ex2 = jnp.sum(x * x, axis=-1, keepdims=True) * inv_c
    var = jnp.maximum(ex2 - mu * mu, 0.0)          # unbiased=False; clamp cancellation
    rstd = jax.lax.rsqrt(var + _EPS)
    s = rstd * w_ref[...]                          # (tm,1)*(1,C) -> (tm,C)
    t = b_ref[...] - mu * s
    o_ref[...] = (x * s + t).astype(o_ref.dtype)


def _ln_packed_kernel(x_ref, w_ref, b_ref, seg_ref, o_ref):
    # Lane-dense path: each 128-lane row holds g = 128/C independent logical rows.
    # seg is the (128,128) block-diagonal matrix with entries 1/C (1/C folded in,
    # exact since C | 128 => power of two), so x @ seg gives, in every lane, the
    # mean over its own group of C lanes (reduce + broadcast in one MXU op).
    x = x_ref[...].astype(jnp.float32)
    seg = seg_ref[...]
    mu = jnp.dot(x, seg, preferred_element_type=jnp.float32,
                 precision=jax.lax.Precision.HIGHEST)
    ex2 = jnp.dot(x * x, seg, preferred_element_type=jnp.float32,
                  precision=jax.lax.Precision.HIGHEST)
    var = jnp.maximum(ex2 - mu * mu, 0.0)
    rstd = jax.lax.rsqrt(var + _EPS)
    s = rstd * w_ref[...]                          # (tm,128)*(1,128)
    t = b_ref[...] - mu * s
    o_ref[...] = (x * s + t).astype(o_ref.dtype)


@jax.jit
def withbias_layernorm(x, weight, bias):
    """x: (..., C); weight, bias: (C,). Returns same shape/dtype as x."""
    orig_shape = x.shape
    orig_dtype = x.dtype
    C = orig_shape[-1]
    rows = int(math.prod(orig_shape[:-1])) if len(orig_shape) > 1 else 1
    x2d = x.reshape(rows, C)
    dtype_bytes = jnp.dtype(x.dtype).itemsize

    w32 = weight.astype(jnp.float32)
    b32 = bias.astype(jnp.float32)

    compiler_params = pltpu.CompilerParams(
        dimension_semantics=_grid_dim_semantics(),
        vmem_limit_bytes=_VMEM_LIMIT_BYTES,
    )

    packed_ok = (C < _LANES) and (_LANES % C == 0) and ((rows * C) % _LANES == 0)

    if packed_ok:
        # --- lane-dense path: pack g logical rows per 128-lane row ---
        g = _LANES // C
        P = (rows * C) // _LANES
        xp = x2d.reshape(P, _LANES)                # free: contiguous row-major view
        w_l = jnp.tile(w32, g).reshape(1, _LANES)
        b_l = jnp.tile(b32, g).reshape(1, _LANES)
        lane = jnp.arange(_LANES, dtype=jnp.int32)
        seg = (lane[:, None] // C == lane[None, :] // C).astype(jnp.float32) * (1.0 / C)

        tm = _pick_rows_per_block(P, _LANES, dtype_bytes)
        grid = (pl.cdiv(P, tm),)

        out = pl.pallas_call(
            _ln_packed_kernel,
            out_shape=jax.ShapeDtypeStruct((P, _LANES), orig_dtype),
            grid_spec=pltpu.PrefetchScalarGridSpec(
                num_scalar_prefetch=0,
                grid=grid,
                in_specs=[
                    pl.BlockSpec((tm, _LANES), lambda i: (i, 0)),
                    pl.BlockSpec((1, _LANES), lambda i: (0, 0)),
                    pl.BlockSpec((1, _LANES), lambda i: (0, 0)),
                    pl.BlockSpec((_LANES, _LANES), lambda i: (0, 0)),
                ],
                out_specs=pl.BlockSpec((tm, _LANES), lambda i: (i, 0)),
            ),
            compiler_params=compiler_params,
        )(xp, w_l, b_l, seg)
        return out.reshape(orig_shape)

    # --- general path: one logical row per VMEM row (lane width = C) ---
    # TODO(synk): for C < 128 with C not dividing 128 (e.g. 48), profile whether
    # this path is DMA-bound (leave it) or lane/store-bound (pad C -> next
    # divisor of 128 and reuse the packed MXU path with a masked seg).
    w2d = w32.reshape(1, C)
    b2d = b32.reshape(1, C)
    tm = _pick_rows_per_block(rows, C, dtype_bytes)
    grid = (pl.cdiv(rows, tm),)
    kernel = functools.partial(_ln_rows_kernel, inv_c=1.0 / C)

    out = pl.pallas_call(
        kernel,
        out_shape=jax.ShapeDtypeStruct((rows, C), orig_dtype),
        grid_spec=pltpu.PrefetchScalarGridSpec(
            num_scalar_prefetch=0,
            grid=grid,
            in_specs=[
                pl.BlockSpec((tm, C), lambda i: (i, 0)),
                pl.BlockSpec((1, C), lambda i: (0, 0)),
                pl.BlockSpec((1, C), lambda i: (0, 0)),
            ],
            out_specs=pl.BlockSpec((tm, C), lambda i: (i, 0)),
        ),
        compiler_params=compiler_params,
    )(x2d, w2d, b2d)
    return out.reshape(orig_shape)


def _reference(x, weight, bias):
    x32 = x.astype(jnp.float32)
    mu = jnp.mean(x32, axis=-1, keepdims=True)
    var = jnp.mean((x32 - mu) ** 2, axis=-1, keepdims=True)
    y = (x32 - mu) / jnp.sqrt(var + _EPS) * weight.astype(jnp.float32) \
        + bias.astype(jnp.float32)
    return y.astype(x.dtype)


if __name__ == "__main__":
    key = jax.random.PRNGKey(0)
    k1, k2, k3, k4 = jax.random.split(key, 4)

    # Case 1: typical Restormer/HFDB usage — x is (B, H*W, C) after to_3d; C=32
    # exercises the lane-dense (packed) MXU path.
    B, N, C = 2, 16 * 16, 32
    x = jax.random.normal(k1, (B, N, C), dtype=jnp.float32)
    weight = jnp.ones((C,), jnp.float32) + 0.1 * jax.random.normal(k2, (C,), jnp.float32)
    bias = 0.05 * jax.random.normal(k3, (C,), jnp.float32)

    out = jax.block_until_ready(withbias_layernorm(x, weight, bias))
    ref = _reference(x, weight, bias)
    assert out.shape == x.shape and out.dtype == x.dtype
    assert jnp.allclose(out, ref, atol=1e-4, rtol=1e-4), "packed-path mismatch vs reference"

    # Case 2: channel count that does not divide 128 — exercises the general path.
    C2 = 48
    x2 = jax.random.normal(k4, (2, 100, C2), dtype=jnp.float32)
    w2 = jnp.ones((C2,), jnp.float32)
    b2 = jnp.zeros((C2,), jnp.float32)
    out2 = jax.block_until_ready(withbias_layernorm(x2, w2, b2))
    ref2 = _reference(x2, w2, b2)
    assert jnp.allclose(out2, ref2, atol=1e-4, rtol=1e-4), "general-path mismatch vs reference"

    print("KERNEL_OK")
</pallas_src>

<mosaic_0001>
module attributes {stable_mosaic.version = 11 : i64} {
  func.func @_ln_packed_kernel(%arg0: i32, %arg1: memref<128x128xf32, #tpu.memory_space<vmem>>, %arg2: memref<1x128xf32, #tpu.memory_space<vmem>>, %arg3: memref<1x128xf32, #tpu.memory_space<vmem>>, %arg4: memref<128x128xf32, #tpu.memory_space<vmem>>, %arg5: memref<128x128xf32, #tpu.memory_space<vmem>>) attributes {dimension_semantics = [#tpu.dimension_semantics<parallel>], iteration_bounds = array<i64: 1>, scalar_prefetch = 0 : i64, scratch_operands = 0 : i64, tpu.core_type = #tpu.core_type<tc>, window_params = [{transform_indices = @transform_0, window_bounds = array<i64: 128, 128>}, {pipeline_mode = #tpu.pipeline_mode<synchronous>, transform_indices = @transform_1, window_bounds = array<i64: 1, 128>}, {pipeline_mode = #tpu.pipeline_mode<synchronous>, transform_indices = @transform_2, window_bounds = array<i64: 1, 128>}, {pipeline_mode = #tpu.pipeline_mode<synchronous>, transform_indices = @transform_3, window_bounds = array<i64: 128, 128>}, {transform_indices = @transform_4, window_bounds = array<i64: 128, 128>}]} {
    %c0 = arith.constant 0 : index
    %c0_0 = arith.constant 0 : index
    %0 = vector.load %arg1[%c0, %c0_0] : memref<128x128xf32, #tpu.memory_space<vmem>>, vector<128x128xf32>
    %c0_1 = arith.constant 0 : index
    %c0_2 = arith.constant 0 : index
    %1 = vector.load %arg4[%c0_1, %c0_2] : memref<128x128xf32, #tpu.memory_space<vmem>>, vector<128x128xf32>
    %cst = arith.constant dense<0.000000e+00> : vector<128x128xf32>
    %2 = tpu.matmul %0, %1, %cst {dimension_numbers = #tpu.dot_dimension_numbers<[1], [0], [0], [1], [0, 0, 1, 1], [], []>, precision = #tpu.contract_precision<fp32>} : vector<128x128xf32>, vector<128x128xf32>, vector<128x128xf32> -> vector<128x128xf32>
    %3 = arith.mulf %0, %0 : vector<128x128xf32>
    %cst_3 = arith.constant dense<0.000000e+00> : vector<128x128xf32>
    %4 = tpu.matmul %3, %1, %cst_3 {dimension_numbers = #tpu.dot_dimension_numbers<[1], [0], [0], [1], [0, 0, 1, 1], [], []>, precision = #tpu.contract_precision<fp32>} : vector<128x128xf32>, vector<128x128xf32>, vector<128x128xf32> -> vector<128x128xf32>
    %5 = arith.mulf %2, %2 : vector<128x128xf32>
    %6 = arith.subf %4, %5 : vector<128x128xf32>
    %cst_4 = arith.constant 0.000000e+00 : f32
    %7 = vector.broadcast %cst_4 : f32 to vector<128x128xf32>
    %8 = arith.maximumf %6, %7 : vector<128x128xf32>
    %cst_5 = arith.constant 9.99999974E-6 : f32
    %9 = vector.broadcast %cst_5 : f32 to vector<128x128xf32>
    %10 = arith.addf %8, %9 : vector<128x128xf32>
    %11 = math.rsqrt %10 : vector<128x128xf32>
    %c0_6 = arith.constant 0 : index
    %c0_7 = arith.constant 0 : index
    %12 = vector.load %arg2[%c0_6, %c0_7] : memref<1x128xf32, #tpu.memory_space<vmem>>, vector<1x128xf32>
    %13 = vector.broadcast %12 : vector<1x128xf32> to vector<128x128xf32>
    %14 = arith.mulf %11, %13 : vector<128x128xf32>
    %c0_8 = arith.constant 0 : index
    %c0_9 = arith.constant 0 : index
    %15 = vector.load %arg3[%c0_8, %c0_9] : memref<1x128xf32, #tpu.memory_space<vmem>>, vector<1x128xf32>
    %16 = arith.mulf %2, %14 : vector<128x128xf32>
    %17 = vector.broadcast %15 : vector<1x128xf32> to vector<128x128xf32>
    %18 = arith.subf %17, %16 : vector<128x128xf32>
    %19 = arith.mulf %0, %14 : vector<128x128xf32>
    %20 = arith.addf %19, %18 : vector<128x128xf32>
    %c0_10 = arith.constant 0 : index
    %c0_11 = arith.constant 0 : index
    %21 = vector.load %arg5[%c0_10, %c0_11] : memref<128x128xf32, #tpu.memory_space<vmem>>, vector<128x128xf32>
    tpu.vector_store %arg5[%c0_10, %c0_11], %20 {strides = array<i32>} : memref<128x128xf32, #tpu.memory_space<vmem>>, vector<128x128xf32>,
    return
  }
  func.func @transform_0(%arg0: i32) -> (i32, i32) {
    %c0_i32 = arith.constant 0 : i32
    %c0_i32_0 = arith.constant 0 : i32
    return %arg0, %c0_i32 : i32, i32
  }
  func.func @transform_1(%arg0: i32) -> (i32, i32) {
    %c0_i32 = arith.constant 0 : i32
    %c0_i32_0 = arith.constant 0 : i32
    %c0_i32_1 = arith.constant 0 : i32
    return %c0_i32, %c0_i32_0 : i32, i32
  }
  func.func @transform_2(%arg0: i32) -> (i32, i32) {
    %c0_i32 = arith.constant 0 : i32
    %c0_i32_0 = arith.constant 0 : i32
    %c0_i32_1 = arith.constant 0 : i32
    return %c0_i32, %c0_i32_0 : i32, i32
  }
  func.func @transform_3(%arg0: i32) -> (i32, i32) {
    %c0_i32 = arith.constant 0 : i32
    %c0_i32_0 = arith.constant 0 : i32
    %c0_i32_1 = arith.constant 0 : i32
    return %c0_i32, %c0_i32_0 : i32, i32
  }
  func.func @transform_4(%arg0: i32) -> (i32, i32) {
    %c0_i32 = arith.constant 0 : i32
    %c0_i32_0 = arith.constant 0 : i32
    return %arg0, %c0_i32 : i32, i32
  }
}

</mosaic_0001>

<bundles_post_ra>
// kernel: tile.13
= control target key start
LH: loop header
LB: loop body
LE: loop exit
PB: predicated region body
PF: predicated region fallthrough
CT: control target
= control target key end

     0   :  { %s22_s0 = inlined_call_operand.vmem [shape: f32[32], index: 0, kind: input, shape index: {}]   ;;  %s23_s1 = inlined_call_operand.vmem [shape: f32[4,32], index: 1, kind: output, shape index: {}]  }
   0x1   :  { %v4_v0 = vld [vmem:[%s22_s0] ss:$0 sm:$0xff] }
   0x2   :  { %5 = vst [vmem:[%s23_s1] sm:$0xf] %v4_v0 }

// kernel: tile.14
= control target key start
LH: loop header
LB: loop body
LE: loop exit
PB: predicated region body
PF: predicated region fallthrough
CT: control target
= control target key end

     0   :  { %s37_s8 = smov 32   ;;  %s38_s9 = smov 64   ;;  %vm7_vm0 = vcmask 261120   ;;  %vm13_vm1 = vcmask 1048320   ;;  %vm19_vm2 = vcmask 785920   ;;  %vm25_vm3 = vcmask 523520   ;;  %s55_s0 = inlined_call_operand.vmem [shape: f32[4,32], index: 0, kind: input, shape index: {}]   ;;  %s56_s1 = inlined_call_operand.vmem [shape: f32[1,128], index: 1, kind: output, shape index: {}]  }
   0x1   :  { %v4_v0 = vld [vmem:[%s55_s0] sm:$0xf]  ;;  %s36_s0 = smov 96  }
   0x2   :  { %5 = vst [vmem:[#allocation1] sm:$0xf] %v4_v0 }
   0x9   :  { %v10_v1 = vld [vmem:[#allocation1 + $0x3] sm:$0x1]   ;;  %v22_v2 = vld [vmem:[#allocation1 + $0x1] sm:$0x1]   ;;  %v16_v3 = vld [vmem:[#allocation1 + $0x2] sm:$0x1]  }
   0xa   :  { %11 = vrot.lane.b32.xlu0 %v10_v1, %s36_s0  ;;  %23 = vrot.lane.b32.xlu1 %v22_v2, %s37_s8  ;;  %v6_v4 = vld [vmem:[#allocation1] sm:$0x1]  }
   0xb   :  { %8 = vst.msk [vmem:[#allocation0] sm:$0x1] %vm7_vm0, %v6_v4  }
  0x12   :  { %17 = vrot.lane.b32.xlu0 %v16_v3, %s38_s9 }
  0x7c   :  { %v12_v5 = vpop.permute.xlu0 %11   ;;  %v24_v6 = vpop.permute.xlu1 %23  }
  0x7d   :  { %14 = vst.msk [vmem:[#allocation0] sm:$0x1] %vm13_vm1, %v12_v5  }
  0x84   :  { %v18_v7 = vpop.permute.xlu0 %17  }
  0x85   :  { %20 = vst.msk [vmem:[#allocation0] sm:$0x1] %vm19_vm2, %v18_v7  }
  0x86   :  { %26 = vst.msk [vmem:[#allocation0] sm:$0x1] %vm25_vm3, %v24_v6  }
  0x8d   :  { %v29_v8 = vld [vmem:[#allocation0] sm:$0x1] }
  0x8e   :  { %32 = vst [vmem:[%s56_s1] sm:$0x1] %v29_v8 }

// kernel: withbias_layernorm.1
= control target key start
LH: loop header
LB: loop body
LE: loop exit
PB: predicated region body
PF: predicated region fallthrough
CT: control target
= control target key end

     0   :  { %s3418_s3 = inlined_call_operand.vmem [shape: f32[128,128], index: 3, kind: input, shape index: {}]   ;;  %s3419_s0 = inlined_call_operand.vmem [shape: f32[128,128], index: 0, kind: input, shape index: {}]   ;;  %s3420_s1 = inlined_call_operand.vmem [shape: f32[1,128], index: 1, kind: input, shape index: {}]   ;;  %s3421_s2 = inlined_call_operand.vmem [shape: f32[1,128], index: 2, kind: input, shape index: {}]   ;;  %s3422_s4 = inlined_call_operand.vmem [shape: f32[128,128], index: 4, kind: output, shape index: {}]  }
   0x1   :  { %v48_v0 = vld [vmem:[%s3418_s3 + $0x78] sm:$0xff]  ;;  %v47_v1 = vld [vmem:[%s3418_s3 + $0x70] sm:$0xff]  ;;  %v46_v2 = vld [vmem:[%s3418_s3 + $0x68] sm:$0xff] }
   0x2   :  { %v2093_v3 = vand.u32 4294901760, %v48_v0  ;;  %v2095_v4 = vand.u32 4294901760, %v47_v1  ;;  %v2097_v5 = vand.u32 4294901760, %v46_v2  ;;  %v45_v6 = vld [vmem:[%s3418_s3 + $0x60] sm:$0xff]  ;;  %v44_v7 = vld [vmem:[%s3418_s3 + $0x58] sm:$0xff]  ;;  %v43_v8 = vld [vmem:[%s3418_s3 + $0x50] sm:$0xff] }
   0x3   :  { %v2108_v9 = vand.u32 4294901760, %v45_v6  ;;  %v2110_v10 = vand.u32 4294901760, %v44_v7  ;;  %v2112_v11 = vand.u32 4294901760, %v43_v8  ;;  %v42_v12 = vld [vmem:[%s3418_s3 + $0x48] sm:$0xff]  ;;  %v41_v13 = vld [vmem:[%s3418_s3 + $0x40] sm:$0xff]  ;;  %v40_v18 = vld [vmem:[%s3418_s3 + $0x38] sm:$0xff] }
   0x4   :  { %50 = vmatpush.msra.mxu0 %v2093_v3  ;;  %v2122_v14 = vsub.f32 %v48_v0, %v2093_v3  ;;  %501 = vmatpush.msra.mxu3 %v2093_v3  ;;  %v2126_v15 = vsub.f32 %v47_v1, %v2095_v4  ;;  %v2129_v16 = vsub.f32 %v46_v2, %v2097_v5  ;;  %v2131_v17 = vand.u32 4294901760, %v42_v12  ;;  %v39_v29 = vld [vmem:[%s3418_s3 + $0x30] sm:$0xff]  ;;  %v38_v36 = vld [vmem:[%s3418_s3 + $0x28] sm:$0xff]  ;;  %v37_v43 = vld [vmem:[%s3418_s3 + $0x20] sm:$0xff] }
   0x5   :  { %v2137_v19 = vsub.f32 %v45_v6, %v2108_v9  ;;  %v2140_v20 = vsub.f32 %v44_v7, %v2110_v10  ;;  %v2142_v21 = vand.u32 4294901760, %v41_v13  ;;  %v2145_v22 = vsub.f32 %v43_v8, %v2112_v11  ;;  %v36_v49 = vld [vmem:[%s3418_s3 + $0x18] sm:$0xff]  ;;  %v35_v55 = vld [vmem:[%s3418_s3 + $0x10] sm:$0xff]  ;;  %v2251_v56 = vld [vmem:[%s3419_s0] sm:$0xff] }
   0x6   :  { %3455 = vst [vmem:[#allocation2_spill] sm:$0xff] %v2126_v15  ;;  %52 = vmatpush.msra.mxu0 %v2095_v4  ;;  %373 = vmatpush.msra.mxu2 %v2122_v14  ;;  %v2150_v23 = vand.u32 4294901760, %v2122_v14  ;;  %v2153_v24 = vand.u32 4294901760, %v2126_v15  ;;  %v2156_v25 = vand.u32 4294901760, %v2129_v16  ;;  %v2162_v27 = vand.u32 4294901760, %v40_v18  ;;  %v34_v62 = vld [vmem:[%s3418_s3 + $0x8] sm:$0xff] }
   0x7   :  { %3456 = vst [vmem:[#allocation3_spill] sm:$0xff] %v2129_v16  ;;  %503 = vmatpush.msra.mxu3 %v2095_v4  ;;  %v2160_v26 = vand.u32 4294901760, %v2137_v19  ;;  %v2165_v28 = vsub.f32 %v42_v12, %v2131_v17  ;;  %v2179_v33 = vand.u32 4294901760, %v2140_v20  ;;  %v2183_v34 = vand.u32 4294901760, %v2145_v22  ;;  %v33_v8 = vld [vmem:[%s3418_s3] sm:$0xff] }
   0x8   :  { %3457 = vst [vmem:[#allocation4_spill] sm:$0xff] %v2137_v19  ;;  %54 = vmatpush.msra.mxu0 %v2097_v5  ;;  %376 = vmatpush.msra.mxu2 %v2126_v15  ;;  %v213_v30 = vsub.f32 %v2122_v14, %v2150_v23  ;;  %v219_v31 = vsub.f32 %v2126_v15, %v2153_v24  ;;  %v2199_v40 = vand.u32 4294901760, %v39_v29  ;;  %v2217_v46 = vand.u32 4294901760, %v38_v36 }
   0x9   :  { %3458 = vst [vmem:[#allocation5_spill] sm:$0xff] %v2140_v20  ;;  %v225_v32 = vsub.f32 %v2129_v16, %v2156_v25  ;;  %505 = vmatpush.msra.mxu3 %v2097_v5  ;;  %v2186_v35 = vsub.f32 %v41_v13, %v2142_v21  ;;  %v231_v39 = vsub.f32 %v2137_v19, %v2160_v26  ;;  %v2203_v41 = vand.u32 4294901760, %v2165_v28 }
   0xa   :  { %3459 = vst [vmem:[#allocation6_spill] sm:$0xff] %v2145_v22  ;;  %56 = vmatpush.msra.mxu0 %v2108_v9  ;;  %v2192_v37 = vand.u32 4294901760, %v213_v30  ;;  %379 = vmatpush.msra.mxu2 %v2129_v16  ;;  %v2195_v38 = vand.u32 4294901760, %v219_v31  ;;  %v2206_v42 = vsub.f32 %v40_v18, %v2162_v27  ;;  %v237_v45 = vsub.f32 %v2140_v20, %v2179_v33  ;;  %v2310_v30 = vld [vmem:[%s3419_s0 + $0x8] sm:$0xff] }
   0xb   :  { %3460 = vst [vmem:[#allocation7_spill] sm:$0xff] %v2165_v28  ;;  %507 = vmatpush.msra.mxu3 %v2108_v9  ;;  %v2213_v44 = vand.u32 4294901760, %v225_v32  ;;  %v243_v47 = vsub.f32 %v2145_v22, %v2183_v34  ;;  %v2224_v48 = vand.u32 4294901760, %v2186_v35  ;;  %v2231_v50 = vand.u32 4294901760, %v231_v39 }
   0xc   :  { %3461 = vst [vmem:[#allocation8_spill] sm:$0xff] %v2186_v35  ;;  %58 = vmatpush.msra.mxu0 %v2110_v10  ;;  %215 = vmatpush.msra.mxu1 %v2192_v37  ;;  %v2233_v51 = vand.u32 4294901760, %v37_v43  ;;  %v2236_v52 = vsub.f32 %v39_v29, %v2199_v40  ;;  %v249_v53 = vsub.f32 %v2165_v28, %v2203_v41  ;;  %v2243_v54 = vand.u32 4294901760, %v2206_v42 }
   0xd   :  { %3462 = vst [vmem:[#allocation9_spill] sm:$0xff] %v2206_v42  ;;  %382 = vmatpush.msra.mxu2 %v2137_v19  ;;  %509 = vmatpush.msra.mxu3 %v2110_v10  ;;  %v2255_v57 = vand.u32 4294901760, %v237_v45  ;;  %v2257_v58 = vand.u32 4294901760, %v36_v49  ;;  %v2260_v59 = vsub.f32 %v38_v36, %v2217_v46  ;;  %v2264_v60 = vand.u32 4294901760, %v243_v47 }
   0xe   :  { %60 = vmatpush.msra.mxu0 %v2112_v11  ;;  %221 = vmatpush.msra.mxu1 %v2195_v38  ;;  %3463 = vst [vmem:[#allocation10_spill] sm:$0xff] %v2236_v52  ;;  %v255_v61 = vsub.f32 %v2186_v35, %v2224_v48  ;;  %v2273_v63 = vand.u32 4294901760, %v35_v55  ;;  %v2276_v0 = vand.u32 4294901760, %v2236_v52  ;;  %v2279_v1 = vsub.f32 %v37_v43, %v2233_v51 }
   0xf   :  { %385 = vmatpush.msra.mxu2 %v2140_v20  ;;  %511 = vmatpush.msra.mxu3 %v2112_v11  ;;  %3464 = vst [vmem:[#allocation11_spill] sm:$0xff] %v2251_v56  ;;  %v2282_v2 = vand.u32 4294901760, %v2251_v56  ;;  %v2286_v6 = vand.u32 4294901760, %v249_v53  ;;  %v261_v7 = vsub.f32 %v2206_v42, %v2243_v54  ;;  %v2295_v12 = vand.u32 4294901760, %v34_v62 }
  0x10   :  { %62 = vmatpush.msra.mxu0 %v2131_v17  ;;  %227 = vmatpush.msra.mxu1 %v2213_v44  ;;  %3465 = vst [vmem:[#allocation12_spill] sm:$0xff] %v2260_v59  ;;  %v2298_v13 = vand.u32 4294901760, %v2260_v59  ;;  %v2301_v18 = vsub.f32 %v36_v49, %v2257_v58  ;;  %v2314_v31 = vand.u32 4294901760, %v255_v61  ;;  %v267_v32 = vsub.f32 %v2236_v52, %v2276_v0 }
  0x11   :  { %388 = vmatpush.msra.mxu2 %v2145_v22  ;;  %513 = vmatpush.msra.mxu3 %v2131_v17  ;;  %3466 = vst [vmem:[#allocation13_spill] sm:$0xff] %v2279_v1  ;;  %v2305_v29 = vsub.f32 %v2251_v56, %v2282_v2  ;;  %v2320_v36 = vand.u32 4294901760, %v33_v8  ;;  %v2323_v39 = vand.u32 4294901760, %v2279_v1  ;;  %v2326_v43 = vsub.f32 %v35_v55, %v2273_v63 }
  0x12   :  { %64 = vmatpush.msra.mxu0 %v2142_v21  ;;  %233 = vmatpush.msra.mxu1 %v2231_v50  ;;  %3467 = vst [vmem:[#allocation14_spill] sm:$0xff] %v2301_v18  ;;  %v2332_v47 = vand.u32 4294901760, %v2310_v30  ;;  %v2336_v49 = vand.u32 4294901760, %v261_v7  ;;  %v273_v53 = vsub.f32 %v2260_v59, %v2298_v13  ;;  %v2341_v55 = vand.u32 4294901760, %v2301_v18 }
  0x13   :  { %391 = vmatpush.msra.mxu2 %v2165_v28  ;;  %515 = vmatpush.msra.mxu3 %v2142_v21  ;;  %3468 = vst [vmem:[#allocation15_spill] sm:$0xff] %v2310_v30  ;;  %v83_v45 = vand.u32 4294901760, %v2305_v29  ;;  %v2344_v61 = vsub.f32 %v34_v62, %v2295_v12  ;;  %v2350_v56 = vand.u32 4294901760, %v267_v32  ;;  %v279_v7 = vsub.f32 %v2279_v1, %v2323_v39 }
  0x14   :  { %66 = vmatpush.msra.mxu0 %v2162_v27  ;;  %239 = vmatpush.msra.mxu1 %v2255_v57  ;;  %3469 = vst [vmem:[#allocation16_spill] sm:$0xff] %v2326_v43  ;;  %v2367_v32 = vand.u32 4294901760, %v273_v53  ;;  %v285_v28 = vsub.f32 %v2301_v18, %v2341_v55 }
  0x15   :  { %394 = vmatpush.msra.mxu2 %v2186_v35  ;;  %517 = vmatpush.msra.mxu3 %v2162_v27  ;;  %3470 = vst [vmem:[#allocation17_spill] sm:$0xff] %v2344_v61  ;;  %v2358_v35 = vsub.f32 %v33_v8, %v2320_v36  ;;  %v84_v62 = vsub.f32 %v2305_v29, %v83_v45  ;;  %v2372_v8 = vand.u32 4294901760, %v2344_v61  ;;  %v2383_v53 = vand.u32 4294901760, %v279_v7 }
  0x16   :  { %68 = vmatpush.msra.mxu0 %v2199_v40  ;;  %245 = vmatpush.msra.mxu1 %v2264_v60  ;;  %v2397_v7 = vand.u32 4294901760, %v285_v28 }
  0x17   :  { %397 = vmatpush.msra.mxu2 %v2206_v42  ;;  %519 = vmatpush.msra.mxu3 %v2199_v40  ;;  %v2355_v42 = vand.u32 4294901760, %v2326_v43  ;;  %v2388_v22 = vand.u32 4294901760, %v2358_v35  ;;  %v85_v20 = vand.u32 4294901760, %v84_v62  ;;  %v297_v16 = vsub.f32 %v2344_v61, %v2372_v8 }
  0x18   :  { %70 = vmatpush.msra.mxu0 %v2217_v46  ;;  %251 = vmatpush.msra.mxu1 %v2286_v6 }
  0x19   :  { %400 = vmatpush.msra.mxu2 %v2236_v52  ;;  %521 = vmatpush.msra.mxu3 %v2217_v46  ;;  %v90_v52 = vsub.f32 %v2310_v30, %v2332_v47  ;;  %v291_v30 = vsub.f32 %v2326_v43, %v2355_v42 }
  0x1a   :  { %72 = vmatpush.msra.mxu0 %v2233_v51  ;;  %257 = vmatpush.msra.mxu1 %v2314_v31 }
  0x1b   :  { %403 = vmatpush.msra.mxu2 %v2260_v59  ;;  %523 = vmatpush.msra.mxu3 %v2233_v51  ;;  %v2377_v59 = vld [vmem:[%s3419_s0 + $0x10] sm:$0xff]  ;;  %v2405_v62 = vand.u32 4294901760, %v291_v30  ;;  %v2419_v30 = vld [vmem:[%s3419_s0 + $0x18] sm:$0xff] }
  0x1c   :  { %74 = vmatpush.msra.mxu0 %v2257_v58  ;;  %263 = vmatpush.msra.mxu1 %v2336_v49  ;;  %3471 = vst [vmem:[#allocation18_spill] sm:$0xff] %v2377_v59  ;;  %v2393_v19 = vand.u32 4294901760, %v2377_v59 }
  0x1d   :  { %406 = vmatpush.msra.mxu2 %v2279_v1  ;;  %525 = vmatpush.msra.mxu3 %v2257_v58  ;;  %v91_v1 = vand.u32 4294901760, %v90_v52 }
  0x1e   :  { %76 = vmatpush.msra.mxu0 %v2273_v63  ;;  %269 = vmatpush.msra.mxu1 %v2350_v56  ;;  %v98_v15 = vsub.f32 %v2377_v59, %v2393_v19 }
  0x1f   :  { %409 = vmatpush.msra.mxu2 %v2301_v18  ;;  %527 = vmatpush.msra.mxu3 %v2273_v63  ;;  %v303_v18 = vsub.f32 %v2358_v35, %v2388_v22  ;;  %v92_v28 = vsub.f32 %v90_v52, %v91_v1 }
  0x20   :  { %78 = vmatpush.msra.mxu0 %v2295_v12  ;;  %275 = vmatpush.msra.mxu1 %v2367_v32  ;;  %v99_v59 = vand.u32 4294901760, %v98_v15 }
  0x21   :  { %412 = vmatpush.msra.mxu2 %v2326_v43  ;;  %529 = vmatpush.msra.mxu3 %v2295_v12  ;;  %v2414_v43 = vand.u32 4294901760, %v297_v16  ;;  %v93_v16 = vand.u32 4294901760, %v92_v28 }
  0x22   :  { %80 = vmatpush.msra.mxu0 %v2320_v36  ;;  %281 = vmatpush.msra.mxu1 %v2383_v53 }
  0x23   :  { %86 = vmatmul.f32.vlgmr.msra.gmra.mxu0 %v85_v20  ;;  %415 = vmatpush.msra.mxu2 %v2344_v61  ;;  %v2424_v20 = vand.u32 4294901760, %v303_v18  ;;  %v2429_v61 = vand.u32 4294901760, %v2419_v30  ;;  %v100_v18 = vsub.f32 %v98_v15, %v99_v59 }
  0x24   :  { %287 = vmatpush.msra.mxu1 %v2397_v7  ;;  %531 = vmatpush.msra.mxu3 %v2320_v36 }
  0x25   :  { %418 = vmatpush.msra.mxu2 %v2358_v35  ;;  %535 = vmatmul.f32.vlgmr.msra.gmra.mxu3 %v83_v45 }
  0x26   :  { %293 = vmatpush.msra.mxu1 %v2405_v62  ;;  %421 = vmatmul.f32.vlgmr.msra.gmra.mxu2 %v2305_v29  ;;  %v106_v29 = vsub.f32 %v2419_v30, %v2429_v61 }
  0x27   :  { %872 = vmatpush.msrb.mxu2 %v2093_v3  ;;  %632 = vmatpush.msrb.mxu0 %v2150_v23 }
  0x28   :  { %299 = vmatpush.msra.mxu1 %v2414_v43  ;;  %1037 = vmatpush.msrb.mxu3 %v2192_v37  ;;  %v2445_v37 = vld [vmem:[%s3419_s0 + $0x20] sm:$0xff]  ;;  %v107_v45 = vand.u32 4294901760, %v106_v29 }
  0x29   :  { %874 = vmatpush.msrb.mxu2 %v2095_v4  ;;  %636 = vmatpush.msrb.mxu0 %v2153_v24  ;;  %v2452_v28 = vand.u32 4294901760, %v2445_v37 }
  0x2a   :  { %305 = vmatpush.msra.mxu1 %v2424_v20  ;;  %1043 = vmatpush.msrb.mxu3 %v2195_v38  ;;  %v101_v38 = vand.u32 4294901760, %v100_v18 }
  0x2b   :  { %94 = vmatmul.f32.gmra.mxu0 %v93_v16  ;;  %307 = vmatmul.f32.vlgmr.msra.gmra.mxu1 %v2282_v2 }
  0x2c   :  { %759 = vmatpush.msrb.mxu1 %v2093_v3  ;;  %876 = vmatpush.msrb.mxu2 %v2097_v5 }
  0x2d   :  { %541 = vmatmul.f32.gmra.mxu3 %v91_v1  ;;  %640 = vmatpush.msrb.mxu0 %v2156_v25  ;;  %v2467_v1 = vld [vmem:[%s3419_s0 + $0x28] sm:$0xff] }
  0x2e   :  { %426 = vmatmul.f32.gmra.mxu2 %v90_v52  ;;  %761 = vmatpush.msrb.mxu1 %v2095_v4  ;;  %v114_v52 = vsub.f32 %v2445_v37, %v2452_v28  ;;  %v2473_v18 = vand.u32 4294901760, %v2467_v1 }
  0x2f   :  { %1049 = vmatpush.msrb.mxu3 %v2213_v44  ;;  %878 = vmatpush.msrb.mxu2 %v2108_v9  ;;  %v108_v44 = vsub.f32 %v106_v29, %v107_v45 }
  0x30   :  { %763 = vmatpush.msrb.mxu1 %v2097_v5  ;;  %644 = vmatpush.msrb.mxu0 %v2160_v26  ;;  %v115_v16 = vand.u32 4294901760, %v114_v52 }
  0x31   :  { %1055 = vmatpush.msrb.mxu3 %v2231_v50  ;;  %880 = vmatpush.msrb.mxu2 %v2110_v10  ;;  %v109_v50 = vand.u32 4294901760, %v108_v44 }
  0x32   :  { %765 = vmatpush.msrb.mxu1 %v2108_v9  ;;  %648 = vmatpush.msrb.mxu0 %v2179_v33 }
  0x33   :  { %102 = vmatmul.f32.gmra.mxu0 %v101_v38  ;;  %311 = vmatmul.f32.gmra.mxu1 %v2332_v47 }
  0x34   :  { %1061 = vmatpush.msrb.mxu3 %v2255_v57  ;;  %767 = vmatpush.msrb.mxu1 %v2110_v10  ;;  %v122_v57 = vsub.f32 %v2467_v1, %v2473_v18 }
  0x35   :  { %547 = vmatmul.f32.gmra.mxu3 %v99_v59  ;;  %882 = vmatpush.msrb.mxu2 %v2112_v11  ;;  %v2489_v59 = vld [vmem:[%s3419_s0 + $0x30] sm:$0xff] }
  0x36   :  { %431 = vmatmul.f32.gmra.mxu2 %v98_v15  ;;  %652 = vmatpush.msrb.mxu0 %v2183_v34  ;;  %v116_v15 = vsub.f32 %v114_v52, %v115_v16  ;;  %v2496_v38 = vand.u32 4294901760, %v2489_v59 }
  0x37   :  { %1067 = vmatpush.msrb.mxu3 %v2264_v60  ;;  %769 = vmatpush.msrb.mxu1 %v2112_v11 }
  0x38   :  { %884 = vmatpush.msrb.mxu2 %v2131_v17  ;;  %656 = vmatpush.msrb.mxu0 %v2203_v41  ;;  %v117_v60 = vand.u32 4294901760, %v116_v15  ;;  %v2558_v15 = vld [vmem:[%s3419_s0 + $0x48] sm:$0xff] }
  0x39   :  { %1073 = vmatpush.msrb.mxu3 %v2286_v6  ;;  %771 = vmatpush.msrb.mxu1 %v2131_v17  ;;  %v123_v6 = vand.u32 4294901760, %v122_v57 }
  0x3a   :  { %886 = vmatpush.msrb.mxu2 %v2142_v21  ;;  %660 = vmatpush.msrb.mxu0 %v2224_v48 }
  0x3b   :  { %110 = vmatmul.f32.gmra.mxu0 %v109_v50  ;;  %315 = vmatmul.f32.gmra.mxu1 %v2393_v19 }
  0x3c   :  { %1079 = vmatpush.msrb.mxu3 %v2314_v31  ;;  %773 = vmatpush.msrb.mxu1 %v2142_v21  ;;  %v124_v31 = vsub.f32 %v122_v57, %v123_v6 }
  0x3d   :  { %553 = vmatmul.f32.gmra.mxu3 %v107_v45  ;;  %888 = vmatpush.msrb.mxu2 %v2162_v27 }
  0x3e   :  { %436 = vmatmul.f32.gmra.mxu2 %v106_v29  ;;  %664 = vmatpush.msrb.mxu0 %v2243_v54  ;;  %v2512_v29 = vld [vmem:[%s3419_s0 + $0x38] sm:$0xff] }
  0x3f   :  { %1085 = vmatpush.msrb.mxu3 %v2336_v49  ;;  %775 = vmatpush.msrb.mxu1 %v2162_v27  ;;  %v130_v49 = vsub.f32 %v2489_v59, %v2496_v38  ;;  %v2519_v44 = vand.u32 4294901760, %v2512_v29 }
  0x40   :  { %890 = vmatpush.msrb.mxu2 %v2199_v40  ;;  %668 = vmatpush.msrb.mxu0 %v2276_v0 }
  0x41   :  { %1091 = vmatpush.msrb.mxu3 %v2350_v56  ;;  %777 = vmatpush.msrb.mxu1 %v2199_v40  ;;  %v125_v56 = vand.u32 4294901760, %v124_v31  ;;  %v131_v45 = vand.u32 4294901760, %v130_v49 }
  0x42   :  { %892 = vmatpush.msrb.mxu2 %v2217_v46  ;;  %672 = vmatpush.msrb.mxu0 %v2298_v13 }
  0x43   :  { %118 = vmatmul.f32.gmra.mxu0 %v117_v60  ;;  %319 = vmatmul.f32.gmra.mxu1 %v2429_v61  ;;  %v3473_v60 = vld [vmem:[#allocation3_spill] sm:$0xff] }
  0x44   :  { %1097 = vmatpush.msrb.mxu3 %v2367_v32  ;;  %779 = vmatpush.msrb.mxu1 %v2217_v46  ;;  %v132_v32 = vsub.f32 %v130_v49, %v131_v45 }
  0x45   :  { %559 = vmatmul.f32.gmra.mxu3 %v115_v16  ;;  %894 = vmatpush.msrb.mxu2 %v2233_v51 }
  0x46   :  { %441 = vmatmul.f32.gmra.mxu2 %v114_v52  ;;  %676 = vmatpush.msrb.mxu0 %v2323_v39  ;;  %v2535_v52 = vld [vmem:[%s3419_s0 + $0x40] sm:$0xff] }
  0x47   :  { %1103 = vmatpush.msrb.mxu3 %v2383_v53  ;;  %781 = vmatpush.msrb.mxu1 %v2233_v51  ;;  %v138_v53 = vsub.f32 %v2512_v29, %v2519_v44  ;;  %v2542_v16 = vand.u32 4294901760, %v2535_v52 }
  0x48   :  { %896 = vmatpush.msrb.mxu2 %v2257_v58  ;;  %680 = vmatpush.msrb.mxu0 %v2341_v55 }
  0x49   :  { %1109 = vmatpush.msrb.mxu3 %v2397_v7  ;;  %783 = vmatpush.msrb.mxu1 %v2257_v58  ;;  %v133_v7 = vand.u32 4294901760, %v132_v32  ;;  %v139_v50 = vand.u32 4294901760, %v138_v53  ;;  %v3479_v32 = vld [vmem:[#allocation9_spill] sm:$0xff] }
  0x4a   :  { %898 = vmatpush.msrb.mxu2 %v2273_v63  ;;  %684 = vmatpush.msrb.mxu0 %v2355_v42 }
  0x4b   :  { %126 = vmatmul.f32.gmra.mxu0 %v125_v56  ;;  %323 = vmatmul.f32.gmra.mxu1 %v2452_v28 }
  0x4c   :  { %1115 = vmatpush.msrb.mxu3 %v2405_v62  ;;  %785 = vmatpush.msrb.mxu1 %v2273_v63  ;;  %v140_v62 = vsub.f32 %v138_v53, %v139_v50 }
  0x4d   :  { %565 = vmatmul.f32.gmra.mxu3 %v123_v6  ;;  %900 = vmatpush.msrb.mxu2 %v2295_v12 }
  0x4e   :  { %446 = vmatmul.f32.gmra.mxu2 %v122_v57  ;;  %688 = vmatpush.msrb.mxu0 %v2372_v8  ;;  %v2565_v57 = vand.u32 4294901760, %v2558_v15 }
  0x4f   :  { %1121 = vmatpush.msrb.mxu3 %v2414_v43  ;;  %787 = vmatpush.msrb.mxu1 %v2295_v12  ;;  %v146_v43 = vsub.f32 %v2535_v52, %v2542_v16 }
  0x50   :  { %902 = vmatpush.msrb.mxu2 %v2320_v36  ;;  %692 = vmatpush.msrb.mxu0 %v2388_v22  ;;  %v154_v6 = vsub.f32 %v2558_v15, %v2565_v57 }
  0x51   :  { %1127 = vmatpush.msrb.mxu3 %v2424_v20  ;;  %789 = vmatpush.msrb.mxu1 %v2320_v36  ;;  %v147_v20 = vand.u32 4294901760, %v146_v43 }
  0x52   :  { %1454 = vmatpush.msra.mxu2 %v2150_v23  ;;  %1195 = vmatpush.msra.mxu0 %v2122_v14  ;;  %v3472_v14 = vld [vmem:[#allocation2_spill] sm:$0xff]  ;;  %v141_v23 = vand.u32 4294901760, %v140_v62 }
  0x53   :  { %134 = vmatmul.f32.gmra.mxu0 %v133_v7  ;;  %327 = vmatmul.f32.gmra.mxu1 %v2473_v18 }
  0x54   :  { %1581 = vmatpush.msra.mxu3 %v2093_v3  ;;  %1323 = vmatpush.msra.mxu1 %v2093_v3  ;;  %v3474_v3 = vld [vmem:[#allocation4_spill] sm:$0xff] }
  0x55   :  { %571 = vmatmul.f32.gmra.mxu3 %v131_v45  ;;  %1458 = vmatpush.msra.mxu2 %v2153_v24  ;;  %v148_v24 = vsub.f32 %v146_v43, %v147_v20 }
  0x56   :  { %451 = vmatmul.f32.gmra.mxu2 %v130_v49  ;;  %1198 = vmatpush.msra.mxu0 %v3472_v14  ;;  %v3476_v49 = vld [vmem:[#allocation6_spill] sm:$0xff]  ;;  %v3485_v14 = vld [vmem:[#allocation17_spill] sm:$0xff] }
  0x57   :  { %1583 = vmatpush.msra.mxu3 %v2095_v4  ;;  %1325 = vmatpush.msra.mxu1 %v2095_v4  ;;  %v2581_v4 = vld [vmem:[%s3419_s0 + $0x50] sm:$0xff] }
  0x58   :  { %1462 = vmatpush.msra.mxu2 %v2156_v25  ;;  %1201 = vmatpush.msra.mxu0 %v3473_v60  ;;  %v149_v25 = vand.u32 4294901760, %v148_v24  ;;  %v2588_v31 = vand.u32 4294901760, %v2581_v4 }
  0x59   :  { %1585 = vmatpush.msra.mxu3 %v2097_v5  ;;  %1327 = vmatpush.msra.mxu1 %v2097_v5  ;;  %v3475_v5 = vld [vmem:[#allocation5_spill] sm:$0xff] }
  0x5a   :  { %1466 = vmatpush.msra.mxu2 %v2160_v26  ;;  %1204 = vmatpush.msra.mxu0 %v3474_v3  ;;  %v155_v26 = vand.u32 4294901760, %v154_v6  ;;  %v162_v56 = vsub.f32 %v2581_v4, %v2588_v31 }
  0x5b   :  { %142 = vmatmul.f32.gmra.mxu0 %v141_v23  ;;  %331 = vmatmul.f32.gmra.mxu1 %v2496_v38 }
  0x5c   :  { %1587 = vmatpush.msra.mxu3 %v2108_v9  ;;  %1329 = vmatpush.msra.mxu1 %v2108_v9  ;;  %v3477_v9 = vld [vmem:[#allocation7_spill] sm:$0xff] }
  0x5d   :  { %577 = vmatmul.f32.gmra.mxu3 %v139_v50  ;;  %1470 = vmatpush.msra.mxu2 %v2179_v33  ;;  %v156_v33 = vsub.f32 %v154_v6, %v155_v26  ;;  %v3482_v50 = vld [vmem:[#allocation13_spill] sm:$0xff] }
  0x5e   :  { %456 = vmatmul.f32.gmra.mxu2 %v138_v53  ;;  %1207 = vmatpush.msra.mxu0 %v3475_v5  ;;  %v3486_v5 = vld [vmem:[#allocation11_spill] sm:$0xff] }
  0x5f   :  { %1589 = vmatpush.msra.mxu3 %v2110_v10  ;;  %1331 = vmatpush.msra.mxu1 %v2110_v10  ;;  %v2604_v10 = vld [vmem:[%s3419_s0 + $0x58] sm:$0xff] }
  0x60   :  { %1474 = vmatpush.msra.mxu2 %v2183_v34  ;;  %1210 = vmatpush.msra.mxu0 %v3476_v49  ;;  %v157_v34 = vand.u32 4294901760, %v156_v33  ;;  %v2611_v45 = vand.u32 4294901760, %v2604_v10 }
  0x61   :  { %1591 = vmatpush.msra.mxu3 %v2112_v11  ;;  %1333 = vmatpush.msra.mxu1 %v2112_v11  ;;  %v3478_v11 = vld [vmem:[#allocation8_spill] sm:$0xff] }
  0x62   :  { %1478 = vmatpush.msra.mxu2 %v2203_v41  ;;  %1213 = vmatpush.msra.mxu0 %v3477_v9  ;;  %v163_v41 = vand.u32 4294901760, %v162_v56  ;;  %v170_v53 = vsub.f32 %v2604_v10, %v2611_v45 }
  0x63   :  { %150 = vmatmul.f32.gmra.mxu0 %v149_v25  ;;  %335 = vmatmul.f32.gmra.mxu1 %v2519_v44  ;;  %v855_v25 = vmul.f32 %v3486_v5, %v3486_v5 }
  0x64   :  { %1593 = vmatpush.msra.mxu3 %v2131_v17  ;;  %1335 = vmatpush.msra.mxu1 %v2131_v17  ;;  %v3480_v17 = vld [vmem:[#allocation10_spill] sm:$0xff] }
  0x65   :  { %583 = vmatmul.f32.gmra.mxu3 %v147_v20  ;;  %1482 = vmatpush.msra.mxu2 %v2224_v48  ;;  %v164_v48 = vsub.f32 %v162_v56, %v163_v41  ;;  %v2686_v20 = vld [vmem:[%s3419_s0 + $0x78] sm:$0xff]  ;;  %v2696_v9 = vand.u32 4294901760, %v855_v25 }
  0x66   :  { %461 = vmatmul.f32.gmra.mxu2 %v146_v43  ;;  %1216 = vmatpush.msra.mxu0 %v3478_v11  ;;  %v2689_v3 = vand.u32 4294901760, %v2686_v20  ;;  %v3487_v11 = vld [vmem:[#allocation15_spill] sm:$0xff] }
  0x67   :  { %1595 = vmatpush.msra.mxu3 %v2142_v21  ;;  %1337 = vmatpush.msra.mxu1 %v2142_v21  ;;  %v2627_v21 = vld [vmem:[%s3419_s0 + $0x60] sm:$0xff] }
  0x68   :  { %1486 = vmatpush.msra.mxu2 %v2243_v54  ;;  %1219 = vmatpush.msra.mxu0 %v3479_v32  ;;  %v165_v54 = vand.u32 4294901760, %v164_v48  ;;  %v2634_v7 = vand.u32 4294901760, %v2627_v21 }
  0x69   :  { %1597 = vmatpush.msra.mxu3 %v2162_v27  ;;  %1339 = vmatpush.msra.mxu1 %v2162_v27  ;;  %v3481_v27 = vld [vmem:[#allocation12_spill] sm:$0xff] }
  0x6a   :  { %1490 = vmatpush.msra.mxu2 %v2276_v0  ;;  %1222 = vmatpush.msra.mxu0 %v3480_v17  ;;  %v171_v0 = vand.u32 4294901760, %v170_v53  ;;  %v178_v62 = vsub.f32 %v2627_v21, %v2634_v7 }
  0x6b   :  { %158 = vmatmul.f32.gmra.mxu0 %v157_v34  ;;  %339 = vmatmul.f32.gmra.mxu1 %v2542_v16  ;;  %v856_v34 = vmul.f32 %v3487_v11, %v3487_v11 }
  0x6c   :  { %1599 = vmatpush.msra.mxu3 %v2199_v40  ;;  %1341 = vmatpush.msra.mxu1 %v2199_v40  ;;  %v3483_v40 = vld [vmem:[#allocation14_spill] sm:$0xff] }
  0x6d   :  { %589 = vmatmul.f32.gmra.mxu3 %v155_v26  ;;  %1494 = vmatpush.msra.mxu2 %v2298_v13  ;;  %v172_v13 = vsub.f32 %v170_v53, %v171_v0  ;;  %v2705_v17 = vand.u32 4294901760, %v856_v34 }
  0x6e   :  { %466 = vmatmul.f32.gmra.mxu2 %v154_v6  ;;  %1225 = vmatpush.msra.mxu0 %v3481_v27  ;;  %v202_v6 = vsub.f32 %v2686_v20, %v2689_v3  ;;  %v3488_v27 = vld [vmem:[#allocation18_spill] sm:$0xff] }
  0x6f   :  { %1601 = vmatpush.msra.mxu3 %v2217_v46  ;;  %1343 = vmatpush.msra.mxu1 %v2217_v46  ;;  %v2650_v46 = vld [vmem:[%s3419_s0 + $0x68] sm:$0xff] }
  0x70   :  { %1498 = vmatpush.msra.mxu2 %v2323_v39  ;;  %1228 = vmatpush.msra.mxu0 %v3482_v50  ;;  %v173_v39 = vand.u32 4294901760, %v172_v13  ;;  %v2657_v43 = vand.u32 4294901760, %v2650_v46  ;;  %v203_v49 = vand.u32 4294901760, %v202_v6 }
  0x71   :  { %1603 = vmatpush.msra.mxu3 %v2233_v51  ;;  %1345 = vmatpush.msra.mxu1 %v2233_v51  ;;  %v3484_v51 = vld [vmem:[#allocation16_spill] sm:$0xff] }
  0x72   :  { %1502 = vmatpush.msra.mxu2 %v2341_v55  ;;  %1231 = vmatpush.msra.mxu0 %v3483_v40  ;;  %v179_v55 = vand.u32 4294901760, %v178_v62  ;;  %v204_v33 = vsub.f32 %v202_v6, %v203_v49 }
  0x73   :  { %166 = vmatmul.f32.gmra.mxu0 %v165_v54  ;;  %343 = vmatmul.f32.gmra.mxu1 %v2565_v57  ;;  %v857_v54 = vmul.f32 %v3488_v27, %v3488_v27 }
  0x74   :  { %1605 = vmatpush.msra.mxu3 %v2257_v58  ;;  %1347 = vmatpush.msra.mxu1 %v2257_v58  ;;  %v186_v58 = vsub.f32 %v2650_v46, %v2657_v43 }
  0x75   :  { %595 = vmatmul.f32.gmra.mxu3 %v163_v41  ;;  %1506 = vmatpush.msra.mxu2 %v2355_v42  ;;  %v180_v42 = vsub.f32 %v178_v62, %v179_v55  ;;  %v205_v41 = vand.u32 4294901760, %v204_v33  ;;  %v2717_v13 = vand.u32 4294901760, %v857_v54 }
  0x76   :  { %471 = vmatmul.f32.gmra.mxu2 %v162_v56  ;;  %1234 = vmatpush.msra.mxu0 %v3484_v51  ;;  %v2700_v56 = vsub.f32 %v855_v25, %v2696_v9 }
  0x77   :  { %1607 = vmatpush.msra.mxu3 %v2273_v63  ;;  %1349 = vmatpush.msra.mxu1 %v2273_v63  ;;  %v2673_v63 = vld [vmem:[%s3419_s0 + $0x70] sm:$0xff]  ;;  %v2726_v51 = vsub.f32 %v857_v54, %v2717_v13  ;;  %v860_v54 = vmul.f32 %v2467_v1, %v2467_v1 }
  0x78   :  { %1510 = vmatpush.msra.mxu2 %v2372_v8  ;;  %1237 = vmatpush.msra.mxu0 %v3485_v14  ;;  %v905_v32 = vand.u32 4294901760, %v2700_v56 }
  0x79   :  { %1609 = vmatpush.msra.mxu3 %v2295_v12  ;;  %1351 = vmatpush.msra.mxu1 %v2295_v12  ;;  %v2678_v12 = vand.u32 4294901760, %v2673_v63 }
  0x7a   :  { %1514 = vmatpush.msra.mxu2 %v2388_v22  ;;  %1240 = vmatpush.msra.mxu0 %v2358_v35  ;;  %v181_v22 = vand.u32 4294901760, %v180_v42  ;;  %v187_v35 = vand.u32 4294901760, %v186_v58  ;;  %v906_v48 = vsub.f32 %v2700_v56, %v905_v32 }
  0x7b   :  { %174 = vmatmul.f32.gmra.mxu0 %v173_v39  ;;  %347 = vmatmul.f32.gmra.mxu1 %v2588_v31  ;;  %v194_v23 = vsub.f32 %v2673_v63, %v2678_v12  ;;  %v858_v39 = vmul.f32 %v2419_v30, %v2419_v30 }
  0x7c   :  { %1611 = vmatpush.msra.mxu3 %v2320_v36  ;;  %1353 = vmatpush.msra.mxu1 %v2320_v36  ;;  %v188_v8 = vsub.f32 %v186_v58, %v187_v35  ;;  %v907_v50 = vand.u32 4294901760, %v906_v48 }
  0x7d   :  { %601 = vmatmul.f32.gmra.mxu3 %v171_v0  ;;  %v195_v60 = vand.u32 4294901760, %v194_v23 }
  0x7e   :  { %476 = vmatmul.f32.gmra.mxu2 %v170_v53  ;;  %v189_v36 = vand.u32 4294901760, %v188_v8  ;;  %v2712_v53 = vsub.f32 %v856_v34, %v2705_v17  ;;  %v3451_v8 = vand.u32 4294901760, %v2726_v51 }
  0x7f   :  { %v196_v24 = vsub.f32 %v194_v23, %v195_v60 }
  0x80   :  { %v3453_v40 = vand.u32 4294901760, %v2712_v53  ;;  %v922_v30 = vsub.f32 %v2726_v51, %v3451_v8 }
  0x81   :  { %v197_v26 = vand.u32 4294901760, %v196_v24 }
  0x82   :  { %v923_v33 = vand.u32 4294901760, %v922_v30 }
  0x83   :  { %182 = vmatmul.f32.gmra.mxu0 %v181_v22  ;;  %351 = vmatmul.f32.gmra.mxu1 %v2611_v45 }
  0x85   :  { %607 = vmatmul.f32.gmra.mxu3 %v179_v55 }
  0x86   :  { %481 = vmatmul.f32.gmra.mxu2 %v178_v62  ;;  %v914_v62 = vsub.f32 %v2712_v53, %v3453_v40 }
  0x8b   :  { %190 = vmatmul.f32.gmra.mxu0 %v189_v36  ;;  %355 = vmatmul.f32.gmra.mxu1 %v2634_v7 }
  0x8d   :  { %613 = vmatmul.f32.gmra.mxu3 %v187_v35  ;;  %v915_v35 = vand.u32 4294901760, %v914_v62 }
  0x8e   :  { %486 = vmatmul.f32.gmra.mxu2 %v186_v58 }
  0x93   :  { %198 = vmatmul.f32.gmra.mxu0 %v197_v26  ;;  %359 = vmatmul.f32.gmra.mxu1 %v2657_v43 }
  0x95   :  { %619 = vmatmul.f32.gmra.mxu3 %v195_v60 }
  0x96   :  { %491 = vmatmul.f32.gmra.mxu2 %v194_v23  ;;  %v2731_v23 = vand.u32 4294901760, %v858_v39 }
  0x98   :  { %v2742_v24 = vsub.f32 %v858_v39, %v2731_v23 }
  0x9a   :  { %v3449_v11 = vand.u32 4294901760, %v2742_v24 }
  0x9b   :  { %206 = vmatmul.f32.gmra.mxu0 %v205_v41  ;;  %363 = vmatmul.f32.gmra.mxu1 %v2678_v12 }
  0x9d   :  { %625 = vmatmul.f32.gmra.mxu3 %v203_v49 }
  0x9e   :  { %496 = vmatmul.f32.gmra.mxu2 %v202_v6  ;;  %v859_v6 = vmul.f32 %v2445_v37, %v2445_v37  ;;  %v930_v37 = vsub.f32 %v2742_v24, %v3449_v11 }
  0xa0   :  { %v87_v0 = vpop.f32.mrf.mxu0  ;;  %v2747_v34 = vand.u32 4294901760, %v859_v6 }
  0xa2   :  { %v2758_v27 = vsub.f32 %v859_v6, %v2747_v34 }
  0xa3   :  { %367 = vmatmul.f32.gmra.mxu1 %v2689_v3  ;;  %694 = vmatmul.f32.vlgmr.msrb.gmra.mxu0 %v2282_v2 }
  0xa5   :  { %1129 = vmatmul.f32.vlgmr.msrb.gmra.mxu3 %v2696_v9 }
  0xa6   :  { %908 = vmatmul.f32.vlgmr.msrb.gmra.mxu2 %v907_v50 }
  0xa8   :  { %v95_v55 = vpop.f32.mrf.mxu0  ;;  %v308_v14 = vpop.f32.mrf.mxu1 }
  0xa9   :  { %v309_v42 = vadd.f32 %v308_v14, %v87_v0  ;;  %v422_v58 = vpop.f32.mrf.mxu2  ;;  %v536_v22 = vpop.f32.mrf.mxu3  ;;  %v3447_v14 = vand.u32 4294901760, %v2758_v27 }
  0xab   :  { %v423_v36 = vadd.f32 %v422_v58, %v309_v42  ;;  %698 = vmatmul.f32.gmra.mxu0 %v2332_v47  ;;  %791 = vmatmul.f32.vlgmr.msrb.gmra.mxu1 %v2282_v2  ;;  %v2763_v42 = vand.u32 4294901760, %v860_v54  ;;  %v938_v1 = vsub.f32 %v2758_v27, %v3447_v14 }
  0xad   :  { %v2735_v60 = vadd.f32 %v536_v22, %v423_v36  ;;  %1133 = vmatmul.f32.gmra.mxu3 %v2705_v17  ;;  %v861_v36 = vmul.f32 %v2489_v59, %v2489_v59 }
  0xae   :  { %916 = vmatmul.f32.gmra.mxu2 %v915_v35  ;;  %v2774_v35 = vsub.f32 %v860_v54, %v2763_v42  ;;  %v862_v54 = vmul.f32 %v2512_v29, %v2512_v29 }
  0xb0   :  { %v103_v5 = vpop.f32.mrf.mxu0  ;;  %v312_v25 = vpop.f32.mrf.mxu1 }
  0xb1   :  { %v313_v26 = vadd.f32 %v312_v25, %v95_v55  ;;  %v427_v49 = vpop.f32.mrf.mxu2  ;;  %v542_v2 = vpop.f32.mrf.mxu3  ;;  %v931_v55 = vand.u32 4294901760, %v930_v37 }
  0xb3   :  { %v428_v41 = vadd.f32 %v427_v49, %v313_v26  ;;  %702 = vmatmul.f32.gmra.mxu0 %v2393_v19  ;;  %795 = vmatmul.f32.gmra.mxu1 %v2332_v47  ;;  %v939_v26 = vand.u32 4294901760, %v938_v1  ;;  %v3445_v49 = vand.u32 4294901760, %v2774_v35 }
  0xb5   :  { %v2751_v48 = vadd.f32 %v542_v2, %v428_v41  ;;  %1137 = vmatmul.f32.gmra.mxu3 %v2717_v13  ;;  %v2779_v2 = vand.u32 4294901760, %v861_v36  ;;  %v946_v59 = vsub.f32 %v2774_v35, %v3445_v49 }
  0xb6   :  { %924 = vmatmul.f32.gmra.mxu2 %v923_v33 }
  0xb7   :  { %v2790_v37 = vsub.f32 %v861_v36, %v2779_v2 }
  0xb8   :  { %v111_v0 = vpop.f32.mrf.mxu0  ;;  %v316_v50 = vpop.f32.mrf.mxu1 }
  0xb9   :  { %v317_v62 = vadd.f32 %v316_v50, %v103_v5  ;;  %v432_v39 = vpop.f32.mrf.mxu2  ;;  %v548_v47 = vpop.f32.mrf.mxu3 }
  0xbb   :  { %v433_v58 = vadd.f32 %v432_v39, %v317_v62  ;;  %706 = vmatmul.f32.gmra.mxu0 %v2429_v61  ;;  %799 = vmatmul.f32.gmra.mxu1 %v2393_v19 }
  0xbd   :  { %v2767_v22 = vadd.f32 %v548_v47, %v433_v58  ;;  %1141 = vmatmul.f32.gmra.mxu3 %v2731_v23  ;;  %v947_v47 = vand.u32 4294901760, %v946_v59  ;;  %v2795_v58 = vand.u32 4294901760, %v862_v54 }
  0xbe   :  { %932 = vmatmul.f32.gmra.mxu2 %v931_v55  ;;  %v3443_v55 = vand.u32 4294901760, %v2790_v37 }
  0xc0   :  { %v119_v30 = vpop.f32.mrf.mxu0  ;;  %v320_v6 = vpop.f32.mrf.mxu1  ;;  %v954_v29 = vsub.f32 %v2790_v37, %v3443_v55 }
  0xc1   :  { %v321_v5 = vadd.f32 %v320_v6, %v111_v0  ;;  %v437_v25 = vpop.f32.mrf.mxu2  ;;  %v554_v19 = vpop.f32.mrf.mxu3  ;;  %v863_v6 = vmul.f32 %v2535_v52, %v2535_v52 }
  0xc3   :  { %v438_v33 = vadd.f32 %v437_v25, %v321_v5  ;;  %710 = vmatmul.f32.gmra.mxu0 %v2452_v28  ;;  %803 = vmatmul.f32.gmra.mxu1 %v2429_v61 }
  0xc5   :  { %v2783_v41 = vadd.f32 %v554_v19, %v438_v33  ;;  %1145 = vmatmul.f32.gmra.mxu3 %v2747_v34  ;;  %v955_v33 = vand.u32 4294901760, %v954_v29 }
  0xc6   :  { %940 = vmatmul.f32.gmra.mxu2 %v939_v26 }
  0xc8   :  { %v127_v0 = vpop.f32.mrf.mxu0  ;;  %v324_v50 = vpop.f32.mrf.mxu1 }
  0xc9   :  { %v325_v62 = vadd.f32 %v324_v50, %v119_v30  ;;  %v442_v39 = vpop.f32.mrf.mxu2  ;;  %v560_v61 = vpop.f32.mrf.mxu3  ;;  %v2806_v30 = vsub.f32 %v862_v54, %v2795_v58  ;;  %v2811_v50 = vand.u32 4294901760, %v863_v6 }
  0xcb   :  { %v443_v1 = vadd.f32 %v442_v39, %v325_v62  ;;  %714 = vmatmul.f32.gmra.mxu0 %v2473_v18  ;;  %807 = vmatmul.f32.gmra.mxu1 %v2452_v28  ;;  %v3441_v59 = vand.u32 4294901760, %v2806_v30  ;;  %v864_v39 = vmul.f32 %v2558_v15, %v2558_v15 }
  0xcd   :  { %v2799_v36 = vadd.f32 %v560_v61, %v443_v1  ;;  %1149 = vmatmul.f32.gmra.mxu3 %v2763_v42  ;;  %v962_v52 = vsub.f32 %v2806_v30, %v3441_v59 }
  0xce   :  { %948 = vmatmul.f32.gmra.mxu2 %v947_v47 }
  0xd0   :  { %v135_v5 = vpop.f32.mrf.mxu0  ;;  %v328_v25 = vpop.f32.mrf.mxu1 }
  0xd1   :  { %v329_v19 = vadd.f32 %v328_v25, %v127_v0  ;;  %v447_v26 = vpop.f32.mrf.mxu2  ;;  %v566_v28 = vpop.f32.mrf.mxu3  ;;  %v2822_v0 = vsub.f32 %v863_v6, %v2811_v50  ;;  %v963_v25 = vand.u32 4294901760, %v962_v52 }
  0xd3   :  { %v448_v62 = vadd.f32 %v447_v26, %v329_v19  ;;  %718 = vmatmul.f32.gmra.mxu0 %v2496_v38  ;;  %811 = vmatmul.f32.gmra.mxu1 %v2473_v18  ;;  %v3440_v19 = vand.u32 4294901760, %v2822_v0  ;;  %v2827_v26 = vand.u32 4294901760, %v864_v39 }
  0xd5   :  { %v2815_v54 = vadd.f32 %v566_v28, %v448_v62  ;;  %1153 = vmatmul.f32.gmra.mxu3 %v2779_v2  ;;  %v970_v15 = vsub.f32 %v2822_v0, %v3440_v19 }
  0xd6   :  { %956 = vmatmul.f32.gmra.mxu2 %v955_v33  ;;  %v865_v33 = vmul.f32 %v2581_v4, %v2581_v4 }
  0xd8   :  { %v143_v61 = vpop.f32.mrf.mxu0  ;;  %v332_v47 = vpop.f32.mrf.mxu1 }
  0xd9   :  { %v333_v1 = vadd.f32 %v332_v47, %v135_v5  ;;  %v452_v29 = vpop.f32.mrf.mxu2  ;;  %v572_v18 = vpop.f32.mrf.mxu3  ;;  %v2838_v5 = vsub.f32 %v864_v39, %v2827_v26 }
  0xdb   :  { %v453_v28 = vadd.f32 %v452_v29, %v333_v1  ;;  %722 = vmatmul.f32.gmra.mxu0 %v2519_v44  ;;  %815 = vmatmul.f32.gmra.mxu1 %v2496_v38  ;;  %v971_v29 = vand.u32 4294901760, %v970_v15  ;;  %v866_v15 = vmul.f32 %v2604_v10, %v2604_v10 }
  0xdd   :  { %v2831_v6 = vadd.f32 %v572_v18, %v453_v28  ;;  %1157 = vmatmul.f32.gmra.mxu3 %v2795_v58  ;;  %v3442_v18 = vand.u32 4294901760, %v2838_v5  ;;  %v2843_v28 = vand.u32 4294901760, %v865_v33  ;;  %v2859_v59 = vand.u32 4294901760, %v866_v15 }
  0xde   :  { %964 = vmatmul.f32.gmra.mxu2 %v963_v25 }
  0xdf   :  { %v978_v4 = vsub.f32 %v2838_v5, %v3442_v18 }
  0xe0   :  { %v151_v62 = vpop.f32.mrf.mxu0  ;;  %v336_v52 = vpop.f32.mrf.mxu1 }
  0xe1   :  { %v337_v47 = vadd.f32 %v336_v52, %v143_v61  ;;  %v457_v1 = vpop.f32.mrf.mxu2  ;;  %v578_v38 = vpop.f32.mrf.mxu3  ;;  %v2854_v61 = vsub.f32 %v865_v33, %v2843_v28 }
  0xe3   :  { %v458_v25 = vadd.f32 %v457_v1, %v337_v47  ;;  %726 = vmatmul.f32.gmra.mxu0 %v2542_v16  ;;  %819 = vmatmul.f32.gmra.mxu1 %v2519_v44 }
  0xe5   :  { %v2847_v39 = vadd.f32 %v578_v38, %v458_v25  ;;  %1161 = vmatmul.f32.gmra.mxu3 %v2811_v50  ;;  %v979_v38 = vand.u32 4294901760, %v978_v4  ;;  %v3444_v25 = vand.u32 4294901760, %v2854_v61  ;;  %v867_v4 = vmul.f32 %v2627_v21, %v2627_v21 }
  0xe6   :  { %972 = vmatmul.f32.gmra.mxu2 %v971_v29 }
  0xe7   :  { %3489 = vst [vmem:[#allocation2_spill] sm:$0xff] %v2847_v39  ;;  %v986_v10 = vsub.f32 %v2854_v61, %v3444_v25  ;;  %v2875_v55 = vand.u32 4294901760, %v867_v4 }
  0xe8   :  { %v159_v52 = vpop.f32.mrf.mxu0  ;;  %v340_v47 = vpop.f32.mrf.mxu1 }
  0xe9   :  { %v341_v1 = vadd.f32 %v340_v47, %v151_v62  ;;  %v462_v19 = vpop.f32.mrf.mxu2  ;;  %v584_v44 = vpop.f32.mrf.mxu3  ;;  %v2870_v62 = vsub.f32 %v866_v15, %v2859_v59 }
  0xeb   :  { %v463_v29 = vadd.f32 %v462_v19, %v341_v1  ;;  %730 = vmatmul.f32.gmra.mxu0 %v2565_v57  ;;  %823 = vmatmul.f32.gmra.mxu1 %v2542_v16 }
  0xed   :  { %v2863_v33 = vadd.f32 %v584_v44, %v463_v29  ;;  %1165 = vmatmul.f32.gmra.mxu3 %v2827_v26  ;;  %v987_v44 = vand.u32 4294901760, %v986_v10  ;;  %v3446_v29 = vand.u32 4294901760, %v2870_v62  ;;  %v868_v10 = vmul.f32 %v2650_v46, %v2650_v46 }
  0xee   :  { %980 = vmatmul.f32.gmra.mxu2 %v979_v38 }
  0xef   :  { %v994_v21 = vsub.f32 %v2870_v62, %v3446_v29  ;;  %v2891_v49 = vand.u32 4294901760, %v868_v10 }
  0xf0   :  { %v167_v19 = vpop.f32.mrf.mxu0  ;;  %v344_v47 = vpop.f32.mrf.mxu1 }
  0xf1   :  { %v345_v1 = vadd.f32 %v344_v47, %v159_v52  ;;  %v467_v18 = vpop.f32.mrf.mxu2  ;;  %v590_v16 = vpop.f32.mrf.mxu3  ;;  %v2886_v52 = vsub.f32 %v867_v4, %v2875_v55 }
  0xf3   :  { %v468_v38 = vadd.f32 %v467_v18, %v345_v1  ;;  %734 = vmatmul.f32.gmra.mxu0 %v2588_v31  ;;  %827 = vmatmul.f32.gmra.mxu1 %v2565_v57 }
  0xf5   :  { %v2879_v15 = vadd.f32 %v590_v16, %v468_v38  ;;  %1169 = vmatmul.f32.gmra.mxu3 %v2843_v28  ;;  %v995_v16 = vand.u32 4294901760, %v994_v21  ;;  %v3448_v38 = vand.u32 4294901760, %v2886_v52  ;;  %v869_v21 = vmul.f32 %v2673_v63, %v2673_v63 }
  0xf6   :  { %988 = vmatmul.f32.gmra.mxu2 %v987_v44 }
  0xf7   :  { %v1002_v46 = vsub.f32 %v2886_v52, %v3448_v38  ;;  %v2907_v14 = vand.u32 4294901760, %v869_v21 }
  0xf8   :  { %v175_v18 = vpop.f32.mrf.mxu0  ;;  %v348_v47 = vpop.f32.mrf.mxu1 }
  0xf9   :  { %v349_v1 = vadd.f32 %v348_v47, %v167_v19  ;;  %v472_v25 = vpop.f32.mrf.mxu2  ;;  %v596_v57 = vpop.f32.mrf.mxu3  ;;  %v2902_v19 = vsub.f32 %v868_v10, %v2891_v49 }
  0xfb   :  { %v473_v44 = vadd.f32 %v472_v25, %v349_v1  ;;  %738 = vmatmul.f32.gmra.mxu0 %v2611_v45  ;;  %831 = vmatmul.f32.gmra.mxu1 %v2588_v31 }
  0xfd   :  { %v2895_v4 = vadd.f32 %v596_v57, %v473_v44  ;;  %1173 = vmatmul.f32.gmra.mxu3 %v2859_v59  ;;  %v1003_v57 = vand.u32 4294901760, %v1002_v46  ;;  %v3450_v44 = vand.u32 4294901760, %v2902_v19  ;;  %v870_v46 = vmul.f32 %v2686_v20, %v2686_v20 }
  0xfe   :  { %996 = vmatmul.f32.gmra.mxu2 %v995_v16 }
  0xff   :  { %v1010_v63 = vsub.f32 %v2902_v19, %v3450_v44  ;;  %v2923_v11 = vand.u32 4294901760, %v870_v46 }
 0x100   :  { %v183_v25 = vpop.f32.mrf.mxu0  ;;  %v352_v47 = vpop.f32.mrf.mxu1 }
 0x101   :  { %v353_v1 = vadd.f32 %v352_v47, %v175_v18  ;;  %v477_v29 = vpop.f32.mrf.mxu2  ;;  %v602_v31 = vpop.f32.mrf.mxu3  ;;  %v2918_v18 = vsub.f32 %v869_v21, %v2907_v14 }
 0x103   :  { %v478_v16 = vadd.f32 %v477_v29, %v353_v1  ;;  %742 = vmatmul.f32.gmra.mxu0 %v2634_v7  ;;  %835 = vmatmul.f32.gmra.mxu1 %v2611_v45 }
 0x105   :  { %v2911_v10 = vadd.f32 %v602_v31, %v478_v16  ;;  %1177 = vmatmul.f32.gmra.mxu3 %v2875_v55  ;;  %v1011_v31 = vand.u32 4294901760, %v1010_v63  ;;  %v3452_v16 = vand.u32 4294901760, %v2918_v18 }
 0x106   :  { %1004 = vmatmul.f32.gmra.mxu2 %v1003_v57 }
 0x107   :  { %v1018_v20 = vsub.f32 %v2918_v18, %v3452_v16 }
 0x108   :  { %v191_v29 = vpop.f32.mrf.mxu0  ;;  %v356_v47 = vpop.f32.mrf.mxu1 }
 0x109   :  { %v357_v1 = vadd.f32 %v356_v47, %v183_v25  ;;  %v482_v38 = vpop.f32.mrf.mxu2  ;;  %v608_v45 = vpop.f32.mrf.mxu3  ;;  %v2934_v25 = vsub.f32 %v870_v46, %v2923_v11  ;;  %v1019_v8 = vand.u32 4294901760, %v1018_v20 }
 0x10b   :  { %v483_v57 = vadd.f32 %v482_v38, %v357_v1  ;;  %746 = vmatmul.f32.gmra.mxu0 %v2657_v43  ;;  %839 = vmatmul.f32.gmra.mxu1 %v2634_v7  ;;  %v3454_v7 = vand.u32 4294901760, %v2934_v25 }
 0x10d   :  { %v2927_v21 = vadd.f32 %v608_v45, %v483_v57  ;;  %1181 = vmatmul.f32.gmra.mxu3 %v2891_v49  ;;  %v1026_v46 = vsub.f32 %v2934_v25, %v3454_v7 }
 0x10e   :  { %1012 = vmatmul.f32.gmra.mxu2 %v1011_v31 }
 0x10f   :  { %v1027_v40 = vand.u32 4294901760, %v1026_v46 }
 0x110   :  { %v199_v63 = vpop.f32.mrf.mxu0  ;;  %v360_v47 = vpop.f32.mrf.mxu1 }
 0x111   :  { %v361_v44 = vadd.f32 %v360_v47, %v191_v29  ;;  %v487_v38 = vpop.f32.mrf.mxu2  ;;  %v614_v1 = vpop.f32.mrf.mxu3 }
 0x113   :  { %v488_v45 = vadd.f32 %v487_v38, %v361_v44  ;;  %750 = vmatmul.f32.gmra.mxu0 %v2678_v12  ;;  %843 = vmatmul.f32.gmra.mxu1 %v2657_v43 }
 0x115   :  { %v2939_v31 = vadd.f32 %v614_v1, %v488_v45  ;;  %1185 = vmatmul.f32.gmra.mxu3 %v2907_v14 }
 0x116   :  { %1020 = vmatmul.f32.gmra.mxu2 %v1019_v8 }
 0x118   :  { %v207_v29 = vpop.f32.mrf.mxu0  ;;  %v364_v57 = vpop.f32.mrf.mxu1 }
 0x119   :  { %v365_v47 = vadd.f32 %v364_v57, %v199_v63  ;;  %v492_v20 = vpop.f32.mrf.mxu2  ;;  %v620_v16 = vpop.f32.mrf.mxu3 }
 0x11b   :  { %v493_v44 = vadd.f32 %v492_v20, %v365_v47  ;;  %754 = vmatmul.f32.gmra.mxu0 %v2689_v3  ;;  %847 = vmatmul.f32.gmra.mxu1 %v2678_v12 }
 0x11d   :  { %v2947_v43 = vadd.f32 %v620_v16, %v493_v44  ;;  %1189 = vmatmul.f32.gmra.mxu3 %v2923_v11  ;;  %v3490_v44 = vand.u32 4294901760, %v2712_v53 }
 0x11e   :  { %1028 = vmatmul.f32.gmra.mxu2 %v1027_v40 }
 0x120   :  { %v368_v8 = vpop.f32.mrf.mxu1  ;;  %v2950_v38 = vpop.f32.mrf.mxu0 }
 0x121   :  { %v369_v1 = vadd.f32 %v368_v8, %v207_v29  ;;  %v497_v45 = vpop.f32.mrf.mxu2  ;;  %v626_v7 = vpop.f32.mrf.mxu3 }
 0x123   :  { %v498_v63 = vadd.f32 %v497_v45, %v369_v1  ;;  %851 = vmatmul.f32.gmra.mxu1 %v2689_v3  ;;  %1243 = vmatmul.f32.vlgmr.msra.gmra.mxu0 %v2700_v56  ;;  %v3491_v45 = vand.u32 4294901760, %v2726_v51 }
 0x125   :  { %v2954_v46 = vadd.f32 %v626_v7, %v498_v63  ;;  %1613 = vmatmul.f32.vlgmr.msra.gmra.mxu3 %v2696_v9 }
 0x126   :  { %1516 = vmatmul.f32.vlgmr.msra.gmra.mxu2 %v2696_v9 }
 0x128   :  { %v2958_v12 = vpop.f32.mrf.mxu0  ;;  %v2960_v40 = vpop.f32.mrf.mxu1 }
 0x129   :  { %v909_v16 = vpop.f32.mrf.mxu2  ;;  %v1130_v57 = vpop.f32.mrf.mxu3 }
 0x12a   :  { %v2962_v29 = vadd.f32 %v1130_v57, %v909_v16 }
 0x12b   :  { %1248 = vmatmul.f32.gmra.mxu0 %v2712_v53  ;;  %1357 = vmatmul.f32.vlgmr.msra.gmra.mxu1 %v905_v32 }
 0x12d   :  { %1617 = vmatmul.f32.gmra.mxu3 %v2705_v17 }
 0x12e   :  { %1520 = vmatmul.f32.gmra.mxu2 %v2705_v17 }
 0x130   :  { %v2969_v3 = vpop.f32.mrf.mxu0  ;;  %v2971_v9 = vpop.f32.mrf.mxu1 }
 0x131   :  { %v917_v7 = vpop.f32.mrf.mxu2  ;;  %v1134_v47 = vpop.f32.mrf.mxu3 }
 0x132   :  { %v2973_v20 = vadd.f32 %v1134_v47, %v917_v7  ;;  %v3492_v7 = vand.u32 4294901760, %v2742_v24 }
 0x133   :  { %1253 = vmatmul.f32.gmra.mxu0 %v2726_v51  ;;  %1363 = vmatmul.f32.gmra.mxu1 %v3490_v44 }
 0x135   :  { %1621 = vmatmul.f32.gmra.mxu3 %v2717_v13 }
 0x136   :  { %1524 = vmatmul.f32.gmra.mxu2 %v2717_v13 }
 0x138   :  { %v2980_v56 = vpop.f32.mrf.mxu0  ;;  %v2982_v32 = vpop.f32.mrf.mxu1 }
 0x139   :  { %v925_v17 = vpop.f32.mrf.mxu2  ;;  %v1138_v8 = vpop.f32.mrf.mxu3 }
 0x13a   :  { %v2984_v1 = vadd.f32 %v1138_v8, %v925_v17  ;;  %v3493_v8 = vand.u32 4294901760, %v2758_v27 }
 0x13b   :  { %1258 = vmatmul.f32.gmra.mxu0 %v2742_v24  ;;  %1369 = vmatmul.f32.gmra.mxu1 %v3491_v45 }
 0x13d   :  { %1625 = vmatmul.f32.gmra.mxu3 %v2731_v23 }
 0x13e   :  { %1528 = vmatmul.f32.gmra.mxu2 %v2731_v23 }
 0x140   :  { %v2991_v53 = vpop.f32.mrf.mxu0  ;;  %v2993_v13 = vpop.f32.mrf.mxu1 }
 0x141   :  { %v933_v63 = vpop.f32.mrf.mxu2  ;;  %v1142_v16 = vpop.f32.mrf.mxu3 }
 0x142   :  { %v2995_v57 = vadd.f32 %v1142_v16, %v933_v63 }
 0x143   :  { %1263 = vmatmul.f32.gmra.mxu0 %v2758_v27  ;;  %1375 = vmatmul.f32.gmra.mxu1 %v3492_v7  ;;  %v3494_v7 = vand.u32 4294901760, %v2774_v35 }
 0x145   :  { %1629 = vmatmul.f32.gmra.mxu3 %v2747_v34 }
 0x146   :  { %1532 = vmatmul.f32.gmra.mxu2 %v2747_v34 }
 0x148   :  { %v3002_v51 = vpop.f32.mrf.mxu0  ;;  %v3004_v23 = vpop.f32.mrf.mxu1 }
 0x149   :  { %v941_v47 = vpop.f32.mrf.mxu2  ;;  %v1146_v44 = vpop.f32.mrf.mxu3 }
 0x14a   :  { %v3006_v17 = vadd.f32 %v1146_v44, %v941_v47 }
 0x14b   :  { %1268 = vmatmul.f32.gmra.mxu0 %v2774_v35  ;;  %1381 = vmatmul.f32.gmra.mxu1 %v3493_v8 }
 0x14d   :  { %1633 = vmatmul.f32.gmra.mxu3 %v2763_v42 }
 0x14e   :  { %1536 = vmatmul.f32.gmra.mxu2 %v2763_v42 }
 0x150   :  { %v3013_v24 = vpop.f32.mrf.mxu0  ;;  %v3015_v34 = vpop.f32.mrf.mxu1 }
 0x151   :  { %v949_v45 = vpop.f32.mrf.mxu2  ;;  %v1150_v63 = vpop.f32.mrf.mxu3 }
 0x152   :  { %v3017_v16 = vadd.f32 %v1150_v63, %v949_v45  ;;  %v3496_v45 = vand.u32 4294901760, %v2790_v37 }
 0x153   :  { %1273 = vmatmul.f32.gmra.mxu0 %v2790_v37  ;;  %1387 = vmatmul.f32.gmra.mxu1 %v3494_v7 }
 0x155   :  { %1637 = vmatmul.f32.gmra.mxu3 %v2779_v2 }
 0x156   :  { %1540 = vmatmul.f32.gmra.mxu2 %v2779_v2 }
 0x158   :  { %v3024_v27 = vpop.f32.mrf.mxu0  ;;  %v3026_v42 = vpop.f32.mrf.mxu1 }
 0x159   :  { %3495 = vst [vmem:[#allocation3_spill] sm:$0xff] %v3024_v27  ;;  %v957_v47 = vpop.f32.mrf.mxu2  ;;  %v1154_v44 = vpop.f32.mrf.mxu3 }
 0x15a   :  { %v3028_v8 = vadd.f32 %v1154_v44, %v957_v47  ;;  %v3498_v47 = vand.u32 4294901760, %v2806_v30 }
 0x15b   :  { %1278 = vmatmul.f32.gmra.mxu0 %v2806_v30  ;;  %1393 = vmatmul.f32.gmra.mxu1 %v3496_v45 }
 0x15d   :  { %1641 = vmatmul.f32.gmra.mxu3 %v2795_v58 }
 0x15e   :  { %1544 = vmatmul.f32.gmra.mxu2 %v2795_v58 }
 0x160   :  { %v727_v35 = vpop.f32.mrf.mxu0  ;;  %v3035_v63 = vpop.f32.mrf.mxu1 }
 0x161   :  { %3497 = vst [vmem:[#allocation4_spill] sm:$0xff] %v3035_v63  ;;  %v728_v2 = vadd.f32 %v727_v35, %v2863_v33  ;;  %v965_v7 = vpop.f32.mrf.mxu2  ;;  %v1158_v27 = vpop.f32.mrf.mxu3 }
 0x162   :  { %v3038_v39 = vadd.f32 %v1158_v27, %v965_v7  ;;  %v3499_v27 = vand.u32 4294901760, %v2822_v0 }
 0x163   :  { %1283 = vmatmul.f32.gmra.mxu0 %v2822_v0  ;;  %1399 = vmatmul.f32.gmra.mxu1 %v3498_v47 }
 0x165   :  { %1645 = vmatmul.f32.gmra.mxu3 %v2811_v50 }
 0x166   :  { %1548 = vmatmul.f32.gmra.mxu2 %v2811_v50 }
 0x168   :  { %v731_v37 = vpop.f32.mrf.mxu0  ;;  %v824_v58 = vpop.f32.mrf.mxu1 }
 0x169   :  { %v732_v44 = vadd.f32 %v731_v37, %v2879_v15  ;;  %v3046_v45 = vadd.f32 %v824_v58, %v728_v2  ;;  %v973_v33 = vpop.f32.mrf.mxu2  ;;  %v1162_v35 = vpop.f32.mrf.mxu3  ;;  %v3500_v58 = vand.u32 4294901760, %v2838_v5 }
 0x16a   :  { %v3048_v63 = vadd.f32 %v1162_v35, %v973_v33 }
 0x16b   :  { %1288 = vmatmul.f32.gmra.mxu0 %v2838_v5  ;;  %1405 = vmatmul.f32.gmra.mxu1 %v3499_v27 }
 0x16d   :  { %1649 = vmatmul.f32.gmra.mxu3 %v2827_v26 }
 0x16e   :  { %1552 = vmatmul.f32.gmra.mxu2 %v2827_v26 }
 0x170   :  { %v735_v30 = vpop.f32.mrf.mxu0  ;;  %v828_v50 = vpop.f32.mrf.mxu1 }
 0x171   :  { %v736_v7 = vadd.f32 %v735_v30, %v2895_v4  ;;  %v3056_v15 = vadd.f32 %v828_v50, %v732_v44  ;;  %v981_v2 = vpop.f32.mrf.mxu2  ;;  %v1166_v47 = vpop.f32.mrf.mxu3  ;;  %v3501_v30 = vand.u32 4294901760, %v2854_v61 }
 0x172   :  { %v3058_v37 = vadd.f32 %v1166_v47, %v981_v2 }
 0x173   :  { %1293 = vmatmul.f32.gmra.mxu0 %v2854_v61  ;;  %1411 = vmatmul.f32.gmra.mxu1 %v3500_v58  ;;  %v3502_v58 = vand.u32 4294901760, %v2870_v62 }
 0x175   :  { %1653 = vmatmul.f32.gmra.mxu3 %v2843_v28 }
 0x176   :  { %1556 = vmatmul.f32.gmra.mxu2 %v2843_v28 }
 0x178   :  { %v739_v0 = vpop.f32.mrf.mxu0  ;;  %v832_v26 = vpop.f32.mrf.mxu1 }
 0x179   :  { %v740_v33 = vadd.f32 %v739_v0, %v2911_v10  ;;  %v3066_v4 = vadd.f32 %v832_v26, %v736_v7  ;;  %v989_v44 = vpop.f32.mrf.mxu2  ;;  %v1170_v35 = vpop.f32.mrf.mxu3 }
 0x17a   :  { %v3068_v27 = vadd.f32 %v1170_v35, %v989_v44  ;;  %v3503_v35 = vand.u32 4294901760, %v2886_v52 }
 0x17b   :  { %1298 = vmatmul.f32.gmra.mxu0 %v2870_v62  ;;  %1417 = vmatmul.f32.gmra.mxu1 %v3501_v30 }
 0x17d   :  { %1657 = vmatmul.f32.gmra.mxu3 %v2859_v59 }
 0x17e   :  { %1560 = vmatmul.f32.gmra.mxu2 %v2859_v59 }
 0x180   :  { %v743_v5 = vpop.f32.mrf.mxu0  ;;  %v836_v28 = vpop.f32.mrf.mxu1 }
 0x181   :  { %v744_v50 = vadd.f32 %v743_v5, %v2927_v21  ;;  %v3076_v10 = vadd.f32 %v836_v28, %v740_v33  ;;  %v997_v7 = vpop.f32.mrf.mxu2  ;;  %v1174_v2 = vpop.f32.mrf.mxu3 }
 0x182   :  { %v3078_v47 = vadd.f32 %v1174_v2, %v997_v7  ;;  %v3504_v7 = vand.u32 4294901760, %v2902_v19 }
 0x183   :  { %1303 = vmatmul.f32.gmra.mxu0 %v2886_v52  ;;  %1423 = vmatmul.f32.gmra.mxu1 %v3502_v58 }
 0x185   :  { %1661 = vmatmul.f32.gmra.mxu3 %v2875_v55 }
 0x186   :  { %1564 = vmatmul.f32.gmra.mxu2 %v2875_v55 }
 0x188   :  { %v747_v59 = vpop.f32.mrf.mxu0  ;;  %v840_v61 = vpop.f32.mrf.mxu1 }
 0x189   :  { %v748_v0 = vadd.f32 %v747_v59, %v2939_v31  ;;  %v3086_v21 = vadd.f32 %v840_v61, %v744_v50  ;;  %v1005_v26 = vpop.f32.mrf.mxu2  ;;  %v1178_v33 = vpop.f32.mrf.mxu3 }
 0x18a   :  { %v3088_v44 = vadd.f32 %v1178_v33, %v1005_v26 }
 0x18b   :  { %1308 = vmatmul.f32.gmra.mxu0 %v2902_v19  ;;  %1429 = vmatmul.f32.gmra.mxu1 %v3503_v35 }
 0x18d   :  { %1665 = vmatmul.f32.gmra.mxu3 %v2891_v49 }
 0x18e   :  { %1568 = vmatmul.f32.gmra.mxu2 %v2891_v49 }
 0x190   :  { %v751_v55 = vpop.f32.mrf.mxu0  ;;  %v844_v62 = vpop.f32.mrf.mxu1 }
 0x191   :  { %v752_v30 = vadd.f32 %v751_v55, %v2947_v43  ;;  %v3096_v31 = vadd.f32 %v844_v62, %v748_v0  ;;  %v1013_v5 = vpop.f32.mrf.mxu2  ;;  %v1182_v28 = vpop.f32.mrf.mxu3  ;;  %v3505_v0 = vand.u32 4294901760, %v2918_v18  ;;  %v3506_v55 = vand.u32 4294901760, %v2934_v25 }
 0x192   :  { %v3098_v50 = vadd.f32 %v1182_v28, %v1013_v5  ;;  %v696_v62 = vadd.f32 %v2950_v38, %v2735_v60 }
 0x193   :  { %1313 = vmatmul.f32.gmra.mxu0 %v2918_v18  ;;  %1435 = vmatmul.f32.gmra.mxu1 %v3504_v7 }
 0x195   :  { %1669 = vmatmul.f32.gmra.mxu3 %v2907_v14 }
 0x196   :  { %1572 = vmatmul.f32.gmra.mxu2 %v2907_v14 }
 0x198   :  { %v755_v49 = vpop.f32.mrf.mxu0  ;;  %v848_v52 = vpop.f32.mrf.mxu1 }
 0x199   :  { %v756_v2 = vadd.f32 %v755_v49, %v2954_v46  ;;  %v3106_v43 = vadd.f32 %v848_v52, %v752_v30  ;;  %v1021_v58 = vpop.f32.mrf.mxu2  ;;  %v1186_v59 = vpop.f32.mrf.mxu3 }
 0x19a   :  { %v3108_v61 = vadd.f32 %v1186_v59, %v1021_v58 }
 0x19b   :  { %1318 = vmatmul.f32.gmra.mxu0 %v2934_v25  ;;  %1441 = vmatmul.f32.gmra.mxu1 %v3505_v0  ;;  %v700_v25 = vadd.f32 %v2958_v12, %v2751_v48  ;;  %v704_v48 = vadd.f32 %v2969_v3, %v2767_v22 }
 0x19d   :  { %1673 = vmatmul.f32.gmra.mxu3 %v2923_v11  ;;  %v3133_v0 = vadd.f32 %v2971_v9, %v700_v25 }
 0x19e   :  { %1576 = vmatmul.f32.gmra.mxu2 %v2923_v11  ;;  %v3125_v11 = vadd.f32 %v2960_v40, %v696_v62 }
 0x19f   :  { %v1678_v62 = vmul.f32 %v3133_v0, %v3133_v0 }
 0x1a0   :  { %v852_v14 = vpop.f32.mrf.mxu1  ;;  %v1244_v19 = vpop.f32.mrf.mxu0 }
 0x1a1   :  { %v3115_v26 = vadd.f32 %v852_v14, %v756_v2  ;;  %v1029_v46 = vpop.f32.mrf.mxu2  ;;  %v1190_v33 = vpop.f32.mrf.mxu3  ;;  %v1245_v18 = vadd.f32 %v1244_v19, %v2962_v29  ;;  %v1677_v2 = vmul.f32 %v3125_v11, %v3125_v11 }
 0x1a2   :  { %v3117_v35 = vadd.f32 %v1190_v33, %v1029_v46 }
 0x1a3   :  { %1447 = vmatmul.f32.gmra.mxu1 %v3506_v55 }
 0x1a8   :  { %v1249_v30 = vpop.f32.mrf.mxu0  ;;  %v1358_v5 = vpop.f32.mrf.mxu1 }
 0x1a9   :  { %v1359_v28 = vadd.f32 %v1358_v5, %v1245_v18  ;;  %v1517_v7 = vpop.f32.mrf.mxu2  ;;  %v1614_v49 = vpop.f32.mrf.mxu3  ;;  %v1250_v60 = vadd.f32 %v1249_v30, %v2973_v20  ;;  %v3141_v5 = vadd.f32 %v2982_v32, %v704_v48 }
 0x1ab   :  { %v1518_v52 = vadd.f32 %v1517_v7, %v1359_v28 }
 0x1ad   :  { %v1615_v58 = vadd.f32 %v1614_v49, %v1518_v52 }
 0x1af   :  { %v1693_v38 = vsub.f32 %v1615_v58, %v1677_v2 }
 0x1b0   :  { %v1254_v29 = vpop.f32.mrf.mxu0  ;;  %v1364_v59 = vpop.f32.mrf.mxu1 }
 0x1b1   :  { %v1709_v40 = vmax.f32 %v1693_v38, 0.0  ;;  %v1365_v14 = vadd.f32 %v1364_v59, %v1250_v60  ;;  %v1521_v19 = vpop.f32.mrf.mxu2  ;;  %v1618_v46 = vpop.f32.mrf.mxu3  ;;  %v1255_v12 = vadd.f32 %v1254_v29, %v2984_v1  ;;  %v1679_v38 = vmul.f32 %v3141_v5, %v3141_v5 }
 0x1b2   :  { %v708_v1 = vadd.f32 %v2980_v56, %v2783_v41  ;;  %v3154_v41 = vld [vmem:[%s3420_s1] ss:$0 sm:$0xff] }
 0x1b3   :  { %v1725_v33 = vadd.f32 1e-05, %v1709_v40  ;;  %v1522_v55 = vadd.f32 %v1521_v19, %v1365_v14 }
 0x1b4   :  { %v3149_v19 = vadd.f32 %v2993_v13, %v708_v1 }
 0x1b5   :  { %2011 = vrsqrt.f32 %v1725_v33  ;;  %v1619_v18 = vadd.f32 %v1618_v46, %v1522_v55  ;;  %vm1747_vm1 = vweird.f32 %v1725_v33 }
 0x1b6   :  { %v1680_v13 = vmul.f32 %v3149_v19, %v3149_v19 }
 0x1b7   :  { %v1694_v20 = vsub.f32 %v1619_v18, %v1678_v62 }
 0x1b8   :  { %v1259_v30 = vpop.f32.mrf.mxu0  ;;  %v1370_v9 = vpop.f32.mrf.mxu1 }
 0x1b9   :  { %v1710_v28 = vmax.f32 %v1694_v20, 0.0  ;;  %v1371_v7 = vadd.f32 %v1370_v9, %v1255_v12  ;;  %v1525_v49 = vpop.f32.mrf.mxu2  ;;  %v1622_v52 = vpop.f32.mrf.mxu3  ;;  %v1260_v32 = vadd.f32 %v1259_v30, %v2995_v57 }
 0x1bb   :  { %v2012_v2 = vpop.eup %2011  ;;  %v1726_v58 = vadd.f32 1e-05, %v1710_v28  ;;  %v1526_v25 = vadd.f32 %v1525_v49, %v1371_v7 }
 0x1bc   :  { %v1742_v60 = vmul.f32 %v2012_v2, %v1725_v33  ;;  %vm1748_vm0 = vweird.f32 %v2012_v2  ;;  %v712_v33 = vadd.f32 %v2991_v53, %v2799_v36  ;;  %v2043_v36 = vld [vmem:[%s3419_s0] sm:$0xff] }
 0x1bd   :  { %2013 = vrsqrt.f32 %v1726_v58  ;;  %v1623_v22 = vadd.f32 %v1622_v52, %v1526_v25  ;;  %vm1749_vm2 = vmor %vm1747_vm1, %vm1748_vm0  ;;  %v3165_v52 = vld [vmem:[%s3421_s2] ss:$0 sm:$0xff]  ;;  %vm1757_vm4 = vweird.f32 %v1726_v58 }
 0x1be   :  { %v1743_v3 = vmul.f32 %v2012_v2, %v1742_v60 }
 0x1bf   :  { %v1695_v29 = vsub.f32 %v1623_v22, %v1679_v38 }
 0x1c0   :  { %v1744_v59 = vmul.f32 0.5, %v1743_v3  ;;  %v1264_v40 = vpop.f32.mrf.mxu0  ;;  %v1376_v14 = vpop.f32.mrf.mxu1 }
 0x1c1   :  { %v1711_v46 = vmax.f32 %v1695_v29, 0.0  ;;  %v1377_v55 = vadd.f32 %v1376_v14, %v1260_v32  ;;  %v1529_v62 = vpop.f32.mrf.mxu2  ;;  %v1626_v18 = vpop.f32.mrf.mxu3  ;;  %v1265_v38 = vadd.f32 %v1264_v40, %v3006_v17 }
 0x1c2   :  { %v1745_v48 = vsub.f32 1.5, %v1744_v59  ;;  %v3172_v59 = vadd.f32 %v3004_v23, %v712_v33 }
 0x1c3   :  { %v2014_v12 = vpop.eup %2013  ;;  %v3156_v56 = vadd.f32 1e-05, %v1711_v46  ;;  %v1530_v57 = vadd.f32 %v1529_v62, %v1377_v55 }
 0x1c4   :  { %v1746_v20 = vmul.f32 %v2012_v2, %v1745_v48  ;;  %v1752_v30 = vmul.f32 %v2014_v12, %v1726_v58  ;;  %vm1758_vm3 = vweird.f32 %v2014_v12  ;;  %v1681_v48 = vmul.f32 %v3172_v59, %v3172_v59 }
 0x1c5   :  { %2015 = vrsqrt.f32 %v3156_v56  ;;  %v1627_v9 = vadd.f32 %v1626_v18, %v1530_v57  ;;  %vm1759_vm5 = vmor %vm1757_vm4, %vm1758_vm3  ;;  %vm1767_vm7 = vweird.f32 %v3156_v56 }
 0x1c6   :  { %v1750_v28 = vsel %vm1749_vm2, %v2012_v2, %v1746_v20  ;;  %v1753_v7 = vmul.f32 %v2014_v12, %v1752_v30 }
 0x1c7   :  { %v1905_v49 = vmul.f32 %v3154_v41, %v1750_v28  ;;  %v1696_v25 = vsub.f32 %v1627_v9, %v1680_v13  ;;  %v716_v13 = vadd.f32 %v3002_v51, %v2815_v54 }
 0x1c8   :  { %v1754_v60 = vmul.f32 0.5, %v1753_v7  ;;  %v1269_v22 = vpop.f32.mrf.mxu0  ;;  %v1382_v3 = vpop.f32.mrf.mxu1 }
 0x1c9   :  { %v1922_v1 = vmul.f32 %v1905_v49, %v3125_v11  ;;  %v1712_v2 = vmax.f32 %v1696_v25, 0.0  ;;  %v1533_v32 = vpop.f32.mrf.mxu2  ;;  %v1630_v29 = vpop.f32.mrf.mxu3  ;;  %v1383_v46 = vadd.f32 %v1382_v3, %v1265_v38  ;;  %v1957_v53 = vmul.f32 %v2043_v36, %v1905_v49 }
 0x1ca   :  { %v1755_v14 = vsub.f32 1.5, %v1754_v60  ;;  %v1270_v9 = vadd.f32 %v1269_v22, %v3017_v16  ;;  %v3192_v33 = vadd.f32 %v3015_v34, %v716_v13  ;;  %v2044_v16 = vld [vmem:[%s3419_s0 + $0x8] sm:$0xff] }
 0x1cb   :  { %v2016_v55 = vpop.eup %2015  ;;  %v1941_v62 = vsub.f32 %v3165_v52, %v1922_v1  ;;  %v3178_v17 = vadd.f32 1e-05, %v1712_v2  ;;  %v1534_v18 = vadd.f32 %v1533_v32, %v1383_v46 }
 0x1cc   :  { %v1756_v11 = vmul.f32 %v2014_v12, %v1755_v14  ;;  %v1762_v40 = vmul.f32 %v2016_v55, %v3156_v56  ;;  %vm1768_vm6 = vweird.f32 %v2016_v55  ;;  %v1682_v14 = vmul.f32 %v3192_v33, %v3192_v33 }
 0x1cd   :  { %v1973_v23 = vadd.f32 %v1957_v53, %v1941_v62  ;;  %2017 = vrsqrt.f32 %v3178_v17  ;;  %v1631_v30 = vadd.f32 %v1630_v29, %v1534_v18  ;;  %vm1769_vm8 = vmor %vm1767_vm7, %vm1768_vm6  ;;  %vm1777_vm10 = vweird.f32 %v3178_v17 }
 0x1ce   :  { %v1760_v57 = vsel %vm1759_vm5, %v2014_v12, %v1756_v11  ;;  %v1763_v20 = vmul.f32 %v2016_v55, %v1762_v40  ;;  %v720_v40 = vadd.f32 %v3013_v24, %v2831_v6  ;;  %v2045_v6 = vld [vmem:[%s3419_s0 + $0x10] sm:$0xff] }
 0x1cf   :  { %1989 = vst [vmem:[%s3422_s4] sm:$0xff] %v1973_v23  ;;  %v1906_v58 = vmul.f32 %v3154_v41, %v1760_v57  ;;  %v1697_v7 = vsub.f32 %v1631_v30, %v1681_v48 }
 0x1d0   :  { %v1764_v28 = vmul.f32 0.5, %v1763_v20  ;;  %v1274_v49 = vpop.f32.mrf.mxu0  ;;  %v1388_v25 = vpop.f32.mrf.mxu1 }
 0x1d1   :  { %v1923_v12 = vmul.f32 %v1906_v58, %v3133_v0  ;;  %v1389_v60 = vadd.f32 %v1388_v25, %v1270_v9  ;;  %v1537_v38 = vpop.f32.mrf.mxu2  ;;  %v1634_v54 = vpop.f32.mrf.mxu3  ;;  %v1713_v3 = vmax.f32 %v1697_v7, 0.0  ;;  %v1958_v22 = vmul.f32 %v2044_v16, %v1906_v58 }
 0x1d2   :  { %v1765_v51 = vsub.f32 1.5, %v1764_v28  ;;  %v1275_v23 = vadd.f32 %v1274_v49, %v3028_v8  ;;  %v3215_v58 = vadd.f32 %v3026_v42, %v720_v40 }
 0x1d3   :  { %v2018_v1 = vpop.eup %2017  ;;  %v1942_v2 = vsub.f32 %v3165_v52, %v1923_v12  ;;  %v1538_v32 = vadd.f32 %v1537_v38, %v1389_v60  ;;  %v3201_v0 = vadd.f32 1e-05, %v1713_v3 }
 0x1d4   :  { %v1766_v29 = vmul.f32 %v2016_v55, %v1765_v51  ;;  %v1772_v34 = vmul.f32 %v2018_v1, %v3178_v17  ;;  %vm1778_vm9 = vweird.f32 %v2018_v1  ;;  %v1683_v60 = vmul.f32 %v3215_v58, %v3215_v58  ;;  %v3507_v17 = vld [vmem:[#allocation2_spill] sm:$0xff] }
 0x1d5   :  { %v1974_v46 = vadd.f32 %v1958_v22, %v1942_v2  ;;  %v1635_v62 = vadd.f32 %v1634_v54, %v1538_v32  ;;  %2019 = vrsqrt.f32 %v3201_v0  ;;  %vm1779_vm11 = vmor %vm1777_vm10, %vm1778_vm9  ;;  %v3508_v2 = vld [vmem:[#allocation3_spill] sm:$0xff]  ;;  %vm1787_vm13 = vweird.f32 %v3201_v0 }
 0x1d6   :  { %v1770_v36 = vsel %vm1769_vm8, %v2016_v55, %v1766_v29  ;;  %v1773_v53 = vmul.f32 %v2018_v1, %v1772_v34  ;;  %v724_v16 = vadd.f32 %v3508_v2, %v3507_v17  ;;  %v2047_v2 = vld [vmem:[%s3419_s0 + $0x20] sm:$0xff] }
 0x1d7   :  { %1990 = vst [vmem:[%s3422_s4 + $0x8] sm:$0xff] %v1974_v46  ;;  %v1907_v56 = vmul.f32 %v3154_v41, %v1770_v36  ;;  %v1698_v11 = vsub.f32 %v1635_v62, %v1682_v14  ;;  %v3509_v36 = vld [vmem:[#allocation4_spill] sm:$0xff] }
 0x1d8   :  { %v1774_v18 = vmul.f32 0.5, %v1773_v53  ;;  %v1279_v48 = vpop.f32.mrf.mxu0  ;;  %v1394_v57 = vpop.f32.mrf.mxu1  ;;  %v3237_v53 = vadd.f32 %v3509_v36, %v724_v16 }
 0x1d9   :  { %v1924_v55 = vmul.f32 %v1907_v56, %v3141_v5  ;;  %v1714_v20 = vmax.f32 %v1698_v11, 0.0  ;;  %v1541_v30 = vpop.f32.mrf.mxu2  ;;  %v1638_v13 = vpop.f32.mrf.mxu3  ;;  %v1395_v28 = vadd.f32 %v1394_v57, %v1275_v23  ;;  %v1959_v24 = vmul.f32 %v2045_v6, %v1907_v56 }
 0x1da   :  { %v1775_v9 = vsub.f32 1.5, %v1774_v18  ;;  %v1280_v22 = vadd.f32 %v1279_v48, %v3038_v39  ;;  %v2046_v39 = vld [vmem:[%s3419_s0 + $0x18] sm:$0xff] }
 0x1db   :  { %v1943_v7 = vsub.f32 %v3165_v52, %v1924_v55  ;;  %v3221_v8 = vadd.f32 1e-05, %v1714_v20  ;;  %v2020_v49 = vpop.eup %2019  ;;  %v1542_v25 = vadd.f32 %v1541_v30, %v1395_v28 }
 0x1dc   :  { %v1776_v5 = vmul.f32 %v2018_v1, %v1775_v9  ;;  %v1782_v42 = vmul.f32 %v2020_v49, %v3201_v0  ;;  %vm1788_vm12 = vweird.f32 %v2020_v49 }
 0x1dd   :  { %v1975_v12 = vadd.f32 %v1959_v24, %v1943_v7  ;;  %2021 = vrsqrt.f32 %v3221_v8  ;;  %v1639_v54 = vadd.f32 %v1638_v13, %v1542_v25  ;;  %v1684_v13 = vmul.f32 %v3237_v53, %v3237_v53  ;;  %vm1789_vm14 = vmor %vm1787_vm13, %vm1788_vm12 }
 0x1de   :  { %v1780_v38 = vsel %vm1779_vm11, %v2018_v1, %v1776_v5  ;;  %v1783_v3 = vmul.f32 %v2020_v49, %v1782_v42  ;;  %vm1797_vm0 = vweird.f32 %v3221_v8 }
 0x1df   :  { %1991 = vst [vmem:[%s3422_s4 + $0x10] sm:$0xff] %v1975_v12  ;;  %v1908_v51 = vmul.f32 %v3154_v41, %v1780_v38  ;;  %v1699_v32 = vsub.f32 %v1639_v54, %v1683_v60 }
 0x1e0   :  { %v1284_v29 = vpop.f32.mrf.mxu0  ;;  %v1400_v34 = vpop.f32.mrf.mxu1  ;;  %v1784_v46 = vmul.f32 0.5, %v1783_v3 }
 0x1e1   :  { %v1925_v14 = vmul.f32 %v1908_v51, %v3149_v19  ;;  %v1545_v1 = vpop.f32.mrf.mxu2  ;;  %v1642_v62 = vpop.f32.mrf.mxu3  ;;  %v1715_v56 = vmax.f32 %v1699_v32, 0.0  ;;  %v1401_v11 = vadd.f32 %v1400_v34, %v1280_v22  ;;  %v1960_v23 = vmul.f32 %v2046_v39, %v1908_v51 }
 0x1e2   :  { %v1785_v48 = vsub.f32 1.5, %v1784_v46  ;;  %v1285_v6 = vadd.f32 %v1284_v29, %v3048_v63 }
 0x1e3   :  { %v2022_v40 = vpop.eup %2021  ;;  %v1944_v18 = vsub.f32 %v3165_v52, %v1925_v14  ;;  %v3244_v57 = vadd.f32 1e-05, %v1715_v56  ;;  %v1546_v55 = vadd.f32 %v1545_v1, %v1401_v11 }
 0x1e4   :  { %v1792_v19 = vmul.f32 %v2022_v40, %v3221_v8  ;;  %v1786_v30 = vmul.f32 %v2020_v49, %v1785_v48  ;;  %vm1798_vm15 = vweird.f32 %v2022_v40 }
 0x1e5   :  { %v1976_v20 = vadd.f32 %v1960_v23, %v1944_v18  ;;  %2023 = vrsqrt.f32 %v3244_v57  ;;  %v1643_v28 = vadd.f32 %v1642_v62, %v1546_v55  ;;  %vm1799_vm1 = vmor %vm1797_vm0, %vm1798_vm15  ;;  %vm1807_vm3 = vweird.f32 %v3244_v57 }
 0x1e6   :  { %v1793_v9 = vmul.f32 %v2022_v40, %v1792_v19  ;;  %v1790_v7 = vsel %vm1789_vm14, %v2020_v49, %v1786_v30 }
 0x1e7   :  { %1992 = vst [vmem:[%s3422_s4 + $0x18] sm:$0xff] %v1976_v20  ;;  %v1909_v24 = vmul.f32 %v3154_v41, %v1790_v7  ;;  %v1700_v25 = vsub.f32 %v1643_v28, %v1684_v13  ;;  %v2048_v20 = vld [vmem:[%s3419_s0 + $0x28] sm:$0xff] }
 0x1e8   :  { %v1794_v5 = vmul.f32 0.5, %v1793_v9  ;;  %v1289_v0 = vpop.f32.mrf.mxu0  ;;  %v1406_v12 = vpop.f32.mrf.mxu1 }
 0x1e9   :  { %v1407_v42 = vadd.f32 %v1406_v12, %v1285_v6  ;;  %v1549_v60 = vpop.f32.mrf.mxu2  ;;  %v1646_v38 = vpop.f32.mrf.mxu3  ;;  %v1926_v54 = vmul.f32 %v1909_v24, %v3172_v59  ;;  %v1716_v3 = vmax.f32 %v1700_v25, 0.0  ;;  %v1961_v16 = vmul.f32 %v2047_v2, %v1909_v24 }
 0x1ea   :  { %v1795_v51 = vsub.f32 1.5, %v1794_v5  ;;  %v1685_v59 = vmul.f32 %v3046_v45, %v3046_v45  ;;  %v1290_v36 = vadd.f32 %v1289_v0, %v3058_v37  ;;  %v1686_v24 = vmul.f32 %v3056_v15, %v3056_v15 }
 0x1eb   :  { %v1550_v17 = vadd.f32 %v1549_v60, %v1407_v42  ;;  %v2024_v49 = vpop.eup %2023  ;;  %v1945_v63 = vsub.f32 %v3165_v52, %v1926_v54  ;;  %v3261_v32 = vadd.f32 1e-05, %v1716_v3 }
 0x1ec   :  { %v1796_v22 = vmul.f32 %v2022_v40, %v1795_v51  ;;  %v1802_v29 = vmul.f32 %v2024_v49, %v3244_v57  ;;  %vm1808_vm2 = vweird.f32 %v2024_v49 }
 0x1ed   :  { %v1647_v34 = vadd.f32 %v1646_v38, %v1550_v17  ;;  %v1977_v8 = vadd.f32 %v1961_v16, %v1945_v63  ;;  %2025 = vrsqrt.f32 %v3261_v32  ;;  %vm1809_vm4 = vmor %vm1807_vm3, %vm1808_vm2  ;;  %vm1817_vm6 = vweird.f32 %v3261_v32 }
 0x1ee   :  { %v1800_v14 = vsel %vm1799_vm1, %v2022_v40, %v1796_v22  ;;  %v1803_v1 = vmul.f32 %v2024_v49, %v1802_v29  ;;  %v2049_v29 = vld [vmem:[%s3419_s0 + $0x30] sm:$0xff] }
 0x1ef   :  { %v1910_v46 = vmul.f32 %v3154_v41, %v1800_v14  ;;  %v1701_v62 = vsub.f32 %v1647_v34, %v1685_v59  ;;  %1993 = vst [vmem:[%s3422_s4 + $0x20] sm:$0xff] %v1977_v8 }
 0x1f0   :  { %v1294_v56 = vpop.f32.mrf.mxu0  ;;  %v1412_v11 = vpop.f32.mrf.mxu1  ;;  %v1804_v39 = vmul.f32 0.5, %v1803_v1 }
 0x1f1   :  { %v1927_v18 = vmul.f32 %v1910_v46, %v3192_v33  ;;  %v1717_v23 = vmax.f32 %v1701_v62, 0.0  ;;  %v1553_v48 = vpop.f32.mrf.mxu2  ;;  %v1650_v40 = vpop.f32.mrf.mxu3  ;;  %v1413_v19 = vadd.f32 %v1412_v11, %v1290_v36  ;;  %v1962_v30 = vmul.f32 %v2048_v20, %v1910_v46 }
 0x1f2   :  { %v1805_v13 = vsub.f32 1.5, %v1804_v39  ;;  %v1295_v12 = vadd.f32 %v1294_v56, %v3068_v27 }
 0x1f3   :  { %v1946_v55 = vsub.f32 %v3165_v52, %v1927_v18  ;;  %v3277_v9 = vadd.f32 1e-05, %v1717_v23  ;;  %v2026_v37 = vpop.eup %2025  ;;  %v1554_v28 = vadd.f32 %v1553_v48, %v1413_v19 }
 0x1f4   :  { %v1806_v33 = vmul.f32 %v2024_v49, %v1805_v13  ;;  %v1812_v6 = vmul.f32 %v2026_v37, %v3261_v32  ;;  %vm1818_vm5 = vweird.f32 %v2026_v37 }
 0x1f5   :  { %v1978_v7 = vadd.f32 %v1962_v30, %v1946_v55  ;;  %2027 = vrsqrt.f32 %v3277_v9  ;;  %v1651_v5 = vadd.f32 %v1650_v40, %v1554_v28  ;;  %vm1819_vm7 = vmor %vm1817_vm6, %vm1818_vm5  ;;  %vm1827_vm9 = vweird.f32 %v3277_v9 }
 0x1f6   :  { %v1810_v25 = vsel %vm1809_vm4, %v2024_v49, %v1806_v33  ;;  %v1813_v0 = vmul.f32 %v2026_v37, %v1812_v6  ;;  %v1687_v49 = vmul.f32 %v3066_v4, %v3066_v4 }
 0x1f7   :  { %1994 = vst [vmem:[%s3422_s4 + $0x28] sm:$0xff] %v1978_v7  ;;  %v1911_v42 = vmul.f32 %v3154_v41, %v1810_v25  ;;  %v1702_v57 = vsub.f32 %v1651_v5, %v1686_v24  ;;  %v2050_v7 = vld [vmem:[%s3419_s0 + $0x38] sm:$0xff] }
 0x1f8   :  { %v1299_v60 = vpop.f32.mrf.mxu0  ;;  %v1418_v38 = vpop.f32.mrf.mxu1  ;;  %v1814_v54 = vmul.f32 0.5, %v1813_v0 }
 0x1f9   :  { %v1419_v51 = vadd.f32 %v1418_v38, %v1295_v12  ;;  %v1557_v3 = vpop.f32.mrf.mxu2  ;;  %v1654_v17 = vpop.f32.mrf.mxu3  ;;  %v1928_v63 = vmul.f32 %v1911_v42, %v3215_v58  ;;  %v1718_v2 = vmax.f32 %v1702_v57, 0.0  ;;  %v1963_v34 = vmul.f32 %v2049_v29, %v1911_v42 }
 0x1fa   :  { %v1815_v16 = vsub.f32 1.5, %v1814_v54  ;;  %v1300_v56 = vadd.f32 %v1299_v60, %v3078_v47 }
 0x1fb   :  { %v1558_v22 = vadd.f32 %v1557_v3, %v1419_v51  ;;  %v2028_v59 = vpop.eup %2027  ;;  %v1947_v27 = vsub.f32 %v3165_v52, %v1928_v63  ;;  %v3296_v8 = vadd.f32 1e-05, %v1718_v2 }
 0x1fc   :  { %v1816_v14 = vmul.f32 %v2026_v37, %v1815_v16  ;;  %v1822_v58 = vmul.f32 %v2028_v59, %v3277_v9  ;;  %vm1828_vm8 = vweird.f32 %v2028_v59 }
 0x1fd   :  { %v1655_v46 = vadd.f32 %v1654_v17, %v1558_v22  ;;  %v1979_v1 = vadd.f32 %v1963_v34, %v1947_v27  ;;  %2029 = vrsqrt.f32 %v3296_v8  ;;  %vm1829_vm10 = vmor %vm1827_vm9, %vm1828_vm8  ;;  %vm1837_vm12 = vweird.f32 %v3296_v8 }
 0x1fe   :  { %v1820_v62 = vsel %vm1819_vm7, %v2026_v37, %v1816_v14  ;;  %v1823_v36 = vmul.f32 %v2028_v59, %v1822_v58  ;;  %v1689_v14 = vmul.f32 %v3086_v21, %v3086_v21 }
 0x1ff   :  { %v1703_v11 = vsub.f32 %v1655_v46, %v1687_v49  ;;  %1995 = vst [vmem:[%s3422_s4 + $0x30] sm:$0xff] %v1979_v1  ;;  %v1912_v18 = vmul.f32 %v3154_v41, %v1820_v62  ;;  %v2051_v49 = vld [vmem:[%s3419_s0 + $0x40] sm:$0xff] }
 0x200   :  { %v1304_v39 = vpop.f32.mrf.mxu0  ;;  %v1424_v32 = vpop.f32.mrf.mxu1  ;;  %v1824_v23 = vmul.f32 0.5, %v1823_v36 }
 0x201   :  { %v1719_v48 = vmax.f32 %v1703_v11, 0.0  ;;  %v1425_v40 = vadd.f32 %v1424_v32, %v1300_v56  ;;  %v1561_v19 = vpop.f32.mrf.mxu2  ;;  %v1658_v55 = vpop.f32.mrf.mxu3  ;;  %v1929_v20 = vmul.f32 %v1912_v18, %v3237_v53  ;;  %v1964_v33 = vmul.f32 %v2050_v7, %v1912_v18 }
 0x202   :  { %v1825_v30 = vsub.f32 1.5, %v1824_v23  ;;  %v1688_v53 = vmul.f32 %v3076_v10, %v3076_v10  ;;  %v1305_v42 = vadd.f32 %v1304_v39, %v3088_v44 }
 0x203   :  { %v3307_v13 = vadd.f32 1e-05, %v1719_v48  ;;  %v1562_v47 = vadd.f32 %v1561_v19, %v1425_v40  ;;  %v2030_v37 = vpop.eup %2029  ;;  %v1948_v28 = vsub.f32 %v3165_v52, %v1929_v20 }
 0x204   :  { %v1826_v6 = vmul.f32 %v2028_v59, %v1825_v30  ;;  %v1832_v24 = vmul.f32 %v2030_v37, %v3296_v8  ;;  %vm1838_vm11 = vweird.f32 %v2030_v37 }
 0x205   :  { %2031 = vrsqrt.f32 %v3307_v13  ;;  %v1980_v5 = vadd.f32 %v1964_v33, %v1948_v28  ;;  %v1659_v25 = vadd.f32 %v1658_v55, %v1562_v47  ;;  %vm1839_vm13 = vmor %vm1837_vm12, %vm1838_vm11  ;;  %vm1847_vm15 = vweird.f32 %v3307_v13 }
 0x206   :  { %v1830_v0 = vsel %vm1829_vm10, %v2028_v59, %v1826_v6  ;;  %v1833_v12 = vmul.f32 %v2030_v37, %v1832_v24  ;;  %v1690_v33 = vmul.f32 %v3096_v31, %v3096_v31 }
 0x207   :  { %1996 = vst [vmem:[%s3422_s4 + $0x38] sm:$0xff] %v1980_v5  ;;  %v1913_v9 = vmul.f32 %v3154_v41, %v1830_v0  ;;  %v1704_v57 = vsub.f32 %v1659_v25, %v1688_v53 }
 0x208   :  { %v1309_v60 = vpop.f32.mrf.mxu0  ;;  %v1430_v38 = vpop.f32.mrf.mxu1  ;;  %v1834_v54 = vmul.f32 0.5, %v1833_v12 }
 0x209   :  { %v1431_v51 = vadd.f32 %v1430_v38, %v1305_v42  ;;  %v1565_v3 = vpop.f32.mrf.mxu2  ;;  %v1662_v17 = vpop.f32.mrf.mxu3  ;;  %v1930_v63 = vmul.f32 %v1913_v9, %v3046_v45  ;;  %v1720_v2 = vmax.f32 %v1704_v57, 0.0  ;;  %v1965_v27 = vmul.f32 %v2051_v49, %v1913_v9 }
 0x20a   :  { %v1835_v22 = vsub.f32 1.5, %v1834_v54  ;;  %v1310_v36 = vadd.f32 %v1309_v60, %v3098_v50  ;;  %v1691_v49 = vmul.f32 %v3106_v43, %v3106_v43 }
 0x20b   :  { %v2032_v16 = vpop.eup %2031  ;;  %v1566_v44 = vadd.f32 %v1565_v3, %v1431_v51  ;;  %v1949_v59 = vsub.f32 %v3165_v52, %v1930_v63  ;;  %v3329_v34 = vadd.f32 1e-05, %v1720_v2 }
 0x20c   :  { %v1842_v29 = vmul.f32 %v2032_v16, %v3307_v13  ;;  %v1836_v45 = vmul.f32 %v2030_v37, %v1835_v22  ;;  %vm1848_vm14 = vweird.f32 %v2032_v16 }
 0x20d   :  { %v1663_v58 = vadd.f32 %v1662_v17, %v1566_v44  ;;  %v1981_v46 = vadd.f32 %v1965_v27, %v1949_v59  ;;  %2033 = vrsqrt.f32 %v3329_v34  ;;  %vm1849_vm0 = vmor %vm1847_vm15, %vm1848_vm14  ;;  %v2053_v17 = vld [vmem:[%s3419_s0 + $0x50] sm:$0xff]  ;;  %vm1857_vm2 = vweird.f32 %v3329_v34 }
 0x20e   :  { %v1843_v1 = vmul.f32 %v2032_v16, %v1842_v29  ;;  %v1840_v62 = vsel %vm1839_vm13, %v2030_v37, %v1836_v45  ;;  %v2052_v37 = vld [vmem:[%s3419_s0 + $0x48] sm:$0xff] }
 0x20f   :  { %v1705_v56 = vsub.f32 %v1663_v58, %v1689_v14  ;;  %1997 = vst [vmem:[%s3422_s4 + $0x40] sm:$0xff] %v1981_v46  ;;  %v1914_v11 = vmul.f32 %v3154_v41, %v1840_v62 }
 0x210   :  { %v1844_v18 = vmul.f32 0.5, %v1843_v1  ;;  %v1436_v39 = vpop.f32.mrf.mxu1  ;;  %v1314_v55 = vpop.f32.mrf.mxu0 }
 0x211   :  { %v1721_v32 = vmax.f32 %v1705_v56, 0.0  ;;  %v1437_v8 = vadd.f32 %v1436_v39, %v1310_v36  ;;  %v1569_v23 = vpop.f32.mrf.mxu2  ;;  %v1666_v48 = vpop.f32.mrf.mxu3  ;;  %v1931_v40 = vmul.f32 %v1914_v11, %v3056_v15  ;;  %v1966_v28 = vmul.f32 %v2052_v37, %v1914_v11 }
 0x212   :  { %v1845_v19 = vsub.f32 1.5, %v1844_v18  ;;  %v1315_v13 = vadd.f32 %v1314_v55, %v3108_v61 }
 0x213   :  { %v3341_v20 = vadd.f32 1e-05, %v1721_v32  ;;  %v1570_v50 = vadd.f32 %v1569_v23, %v1437_v8  ;;  %v2034_v30 = vpop.eup %2033  ;;  %v1950_v47 = vsub.f32 %v3165_v52, %v1931_v40 }
 0x214   :  { %v1846_v7 = vmul.f32 %v2032_v16, %v1845_v19  ;;  %v1852_v15 = vmul.f32 %v2034_v30, %v3329_v34  ;;  %vm1858_vm1 = vweird.f32 %v2034_v30 }
 0x215   :  { %2035 = vrsqrt.f32 %v3341_v20  ;;  %v1982_v6 = vadd.f32 %v1966_v28, %v1950_v47  ;;  %v1667_v53 = vadd.f32 %v1666_v48, %v1570_v50  ;;  %vm1859_vm3 = vmor %vm1857_vm2, %vm1858_vm1  ;;  %vm1867_vm5 = vweird.f32 %v3341_v20 }
 0x216   :  { %v1850_v24 = vsel %vm1849_vm0, %v2032_v16, %v1846_v7  ;;  %v1853_v25 = vmul.f32 %v2034_v30, %v1852_v15 }
 0x217   :  { %v1915_v5 = vmul.f32 %v3154_v41, %v1850_v24  ;;  %1998 = vst [vmem:[%s3422_s4 + $0x48] sm:$0xff] %v1982_v6  ;;  %v1706_v0 = vsub.f32 %v1667_v53, %v1690_v33  ;;  %v2055_v24 = vld [vmem:[%s3419_s0 + $0x60] sm:$0xff] }
 0x218   :  { %v1442_v12 = vpop.f32.mrf.mxu1  ;;  %v1854_v9 = vmul.f32 0.5, %v1853_v25  ;;  %v1319_v22 = vpop.f32.mrf.mxu0 }
 0x219   :  { %v1932_v42 = vmul.f32 %v1915_v5, %v3066_v4  ;;  %v1573_v57 = vpop.f32.mrf.mxu2  ;;  %v1670_v60 = vpop.f32.mrf.mxu3  ;;  %v1722_v38 = vmax.f32 %v1706_v0, 0.0  ;;  %v1443_v54 = vadd.f32 %v1442_v12, %v1315_v13  ;;  %v1967_v63 = vmul.f32 %v2053_v17, %v1915_v5  ;;  %v2056_v17 = vld [vmem:[%s3419_s0 + $0x68] sm:$0xff] }
 0x21a   :  { %v1855_v2 = vsub.f32 1.5, %v1854_v9  ;;  %v1320_v45 = vadd.f32 %v1319_v22, %v3117_v35  ;;  %v2054_v35 = vld [vmem:[%s3419_s0 + $0x58] sm:$0xff] }
 0x21b   :  { %v2036_v51 = vpop.eup %2035  ;;  %v1951_v3 = vsub.f32 %v3165_v52, %v1932_v42  ;;  %v1738_v16 = vadd.f32 1e-05, %v1722_v38  ;;  %v1574_v4 = vadd.f32 %v1573_v57, %v1443_v54 }
 0x21c   :  { %v1862_v61 = vmul.f32 %v2036_v51, %v3341_v20  ;;  %v1856_v59 = vmul.f32 %v2034_v30, %v1855_v2  ;;  %vm1868_vm4 = vweird.f32 %v2036_v51 }
 0x21d   :  { %v1983_v44 = vadd.f32 %v1967_v63, %v1951_v3  ;;  %2037 = vrsqrt.f32 %v1738_v16  ;;  %v1671_v29 = vadd.f32 %v1670_v60, %v1574_v4  ;;  %vm1869_vm6 = vmor %vm1867_vm5, %vm1868_vm4  ;;  %vm1877_vm8 = vweird.f32 %v1738_v16 }
 0x21e   :  { %v1863_v27 = vmul.f32 %v2036_v51, %v1862_v61  ;;  %v1860_v14 = vsel %vm1859_vm3, %v2034_v30, %v1856_v59 }
 0x21f   :  { %1999 = vst [vmem:[%s3422_s4 + $0x50] sm:$0xff] %v1983_v44  ;;  %v1916_v58 = vmul.f32 %v3154_v41, %v1860_v14  ;;  %v1707_v1 = vsub.f32 %v1671_v29, %v1691_v49  ;;  %v2057_v29 = vld [vmem:[%s3419_s0 + $0x70] sm:$0xff] }
 0x220   :  { %v1864_v46 = vmul.f32 0.5, %v1863_v27  ;;  %v1448_v62 = vpop.f32.mrf.mxu1 }
 0x221   :  { %v1449_v34 = vadd.f32 %v1448_v62, %v1320_v45  ;;  %v1577_v36 = vpop.f32.mrf.mxu2  ;;  %v1933_v56 = vmul.f32 %v1916_v58, %v3076_v10  ;;  %v1723_v18 = vmax.f32 %v1707_v1, 0.0  ;;  %v1674_v39 = vpop.f32.mrf.mxu3  ;;  %v1968_v48 = vmul.f32 %v2054_v35, %v1916_v58 }
 0x222   :  { %v1865_v11 = vsub.f32 1.5, %v1864_v46  ;;  %v1692_v10 = vmul.f32 %v3115_v26, %v3115_v26 }
 0x223   :  { %v1578_v32 = vadd.f32 %v1577_v36, %v1449_v34  ;;  %v2038_v8 = vpop.eup %2037  ;;  %v1952_v23 = vsub.f32 %v3165_v52, %v1933_v56  ;;  %v1739_v19 = vadd.f32 1e-05, %v1723_v18  ;;  %v2058_v34 = vld [vmem:[%s3419_s0 + $0x78] sm:$0xff] }
 0x224   :  { %v1866_v40 = vmul.f32 %v2036_v51, %v1865_v11  ;;  %v1872_v55 = vmul.f32 %v2038_v8, %v1738_v16  ;;  %vm1878_vm7 = vweird.f32 %v2038_v8 }
 0x225   :  { %v1675_v50 = vadd.f32 %v1674_v39, %v1578_v32  ;;  %v1984_v30 = vadd.f32 %v1968_v48, %v1952_v23  ;;  %2039 = vrsqrt.f32 %v1739_v19  ;;  %vm1879_vm9 = vmor %vm1877_vm8, %vm1878_vm7  ;;  %vm1887_vm11 = vweird.f32 %v1739_v19 }
 0x226   :  { %v1870_v47 = vsel %vm1869_vm6, %v2036_v51, %v1866_v40  ;;  %v1873_v37 = vmul.f32 %v2038_v8, %v1872_v55 }
 0x227   :  { %v1917_v20 = vmul.f32 %v3154_v41, %v1870_v47  ;;  %v1708_v28 = vsub.f32 %v1675_v50, %v1692_v10  ;;  %2000 = vst [vmem:[%s3422_s4 + $0x58] sm:$0xff] %v1984_v30 }
 0x228   :  { %v1874_v15 = vmul.f32 0.5, %v1873_v37 }
 0x229   :  { %v1934_v7 = vmul.f32 %v1917_v20, %v3086_v21  ;;  %v1724_v33 = vmax.f32 %v1708_v28, 0.0  ;;  %v1969_v53 = vmul.f32 %v2055_v24, %v1917_v20 }
 0x22a   :  { %v1875_v5 = vsub.f32 1.5, %v1874_v15 }
 0x22b   :  { %v1953_v6 = vsub.f32 %v3165_v52, %v1934_v7  ;;  %v1740_v25 = vadd.f32 1e-05, %v1724_v33  ;;  %v2040_v13 = vpop.eup %2039 }
 0x22c   :  { %v1876_v12 = vmul.f32 %v2038_v8, %v1875_v5  ;;  %v1882_v42 = vmul.f32 %v2040_v13, %v1739_v19  ;;  %vm1888_vm10 = vweird.f32 %v2040_v13 }
 0x22d   :  { %v1985_v0 = vadd.f32 %v1969_v53, %v1953_v6  ;;  %2041 = vrsqrt.f32 %v1740_v25  ;;  %vm1889_vm12 = vmor %vm1887_vm11, %vm1888_vm10  ;;  %vm1897_vm14 = vweird.f32 %v1740_v25 }
 0x22e   :  { %v1880_v21 = vsel %vm1879_vm9, %v2038_v8, %v1876_v12  ;;  %v1883_v9 = vmul.f32 %v2040_v13, %v1882_v42 }
 0x22f   :  { %2001 = vst [vmem:[%s3422_s4 + $0x60] sm:$0xff] %v1985_v0  ;;  %v1918_v57 = vmul.f32 %v3154_v41, %v1880_v21 }
 0x230   :  { %v1884_v60 = vmul.f32 0.5, %v1883_v9 }
 0x231   :  { %v1935_v38 = vmul.f32 %v1918_v57, %v3096_v31  ;;  %v1970_v63 = vmul.f32 %v2056_v17, %v1918_v57 }
 0x232   :  { %v1885_v54 = vsub.f32 1.5, %v1884_v60 }
 0x233   :  { %v2042_v51 = vpop.eup %2041  ;;  %v1954_v3 = vsub.f32 %v3165_v52, %v1935_v38 }
 0x234   :  { %v1886_v2 = vmul.f32 %v2040_v13, %v1885_v54  ;;  %v1892_v61 = vmul.f32 %v2042_v51, %v1740_v25  ;;  %vm1898_vm13 = vweird.f32 %v2042_v51 }
 0x235   :  { %v1986_v16 = vadd.f32 %v1970_v63, %v1954_v3  ;;  %vm1899_vm15 = vmor %vm1897_vm14, %vm1898_vm13 }
 0x236   :  { %v1890_v22 = vsel %vm1889_vm12, %v2040_v13, %v1886_v2  ;;  %v1893_v4 = vmul.f32 %v2042_v51, %v1892_v61 }
 0x237   :  { %2002 = vst [vmem:[%s3422_s4 + $0x68] sm:$0xff] %v1986_v16  ;;  %v1919_v31 = vmul.f32 %v3154_v41, %v1890_v22 }
 0x238   :  { %v1894_v44 = vmul.f32 0.5, %v1893_v4 }
 0x239   :  { %v1936_v59 = vmul.f32 %v1919_v31, %v3106_v43  ;;  %v1971_v14 = vmul.f32 %v2057_v29, %v1919_v31 }
 0x23a   :  { %v1895_v49 = vsub.f32 1.5, %v1894_v44 }
 0x23b   :  { %v1955_v27 = vsub.f32 %v3165_v52, %v1936_v59 }
 0x23c   :  { %v1896_v45 = vmul.f32 %v2042_v51, %v1895_v49 }
 0x23d   :  { %v1987_v58 = vadd.f32 %v1971_v14, %v1955_v27 }
 0x23e   :  { %v1900_v46 = vsel %vm1899_vm15, %v2042_v51, %v1896_v45 }
 0x23f   :  { %2003 = vst [vmem:[%s3422_s4 + $0x70] sm:$0xff] %v1987_v58  ;;  %v1920_v43 = vmul.f32 %v3154_v41, %v1900_v46 }
 0x241   :  { %v1937_v1 = vmul.f32 %v1920_v43, %v3115_v26  ;;  %v1972_v36 = vmul.f32 %v2058_v34, %v1920_v43 }
 0x243   :  { %v1956_v62 = vsub.f32 %v3165_v52, %v1937_v1 }
 0x245   :  { %v1988_v56 = vadd.f32 %v1972_v36, %v1956_v62 }
 0x247   :  { %2004 = vst [vmem:[%s3422_s4 + $0x78] sm:$0xff] %v1988_v56 }

</bundles_post_ra>
